<compile_context>
chip_gen: v7x
topology: tpu7x:2x2x1
jax: 0.10.0
libtpu: 0.0.40
codegen_flags: <defaults>
</compile_context>

<pallas_src>
import jax
import jax.numpy as jnp
from jax import lax
from jax.experimental import pallas as pl
from jax.experimental.pallas import tpu as pltpu

BN_EPS = 1e-5
POOL_H = 8          # spatial size after 2x2 max-pool of the 16x16 input
POOL_W = 8
K_CONV1 = 27        # 3 * 3 * 3 input-patch features for conv1
K_PAD = 32          # conv1 reduction dim zero-padded to a multiple of 8
HID_PAD = 128       # fc1 hidden width (32) zero-padded to a full lane tile
OUT_PAD = 128       # fc2 output width (10) zero-padded to a full lane tile


# --------------------------------------------------------------------------
# Pallas kernels
# --------------------------------------------------------------------------
def fused_features_kernel(patches_ref, w1_ref, b1_ref,
                          wblk_ref, gamma_ref, beta_ref, o_ref):
    """conv1(3x3,pad1)+bias+relu+maxpool(2) followed by all ResBlocks, fused.

    patches_ref : [4*N, K_PAD]  bf16  im2col rows, grouped p-major by pool pos
    w1_ref      : [K_PAD, C]    bf16
    b1_ref      : [1, C]        f32
    wblk_ref    : [blocks, 4*C, C] bf16  2x2 conv taps stacked (tap-major rows)
    gamma_ref   : [blocks, 1, C] f32   BN weight
    beta_ref    : [blocks, 1, C] f32   BN bias
    o_ref       : [N, C]        bf16   N = B*8*8, NHWC row order (b, i, j)
    """
    N, C = o_ref.shape
    num_blocks = wblk_ref.shape[0]
    inv_n = 1.0 / N

    # ---- conv1 + bias + relu + 2x2 max-pool ---------------------------------
    # One [4N, K] x [K, C] bf16 matmul (f32 accumulate), max over the 4
    # pool-position row groups, then bias + relu once (max commutes with the
    # constant bias add; relu is monotone).
    y = jnp.dot(patches_ref[...], w1_ref[...],
                preferred_element_type=jnp.float32)               # [4N, C] f32
    m = jnp.maximum(jnp.maximum(y[0 * N:1 * N], y[1 * N:2 * N]),
                    jnp.maximum(y[2 * N:3 * N], y[3 * N:4 * N]))  # [N, C]
    feat = jnp.maximum(m + b1_ref[...], 0.0)                      # f32

    # ---- edge masks for the roll-based 2x2 taps (built ONCE, pre-broadcast) -
    # Rows are ordered (b, i, j) with i, j in [0, 8): j = r & 7, i = (r>>3)&7.
    # Tap (dy, dx) reads neighbour (i+dy, j+dx); zero past the bottom/right
    # edge (shape-preserving 2x2 conv).
    r_idx = lax.broadcasted_iota(jnp.int32, (N, C), 0)
    col_j = r_idx & (POOL_W - 1)
    row_i = (r_idx >> 3) & (POOL_H - 1)
    m_dx = (col_j < POOL_W - 1).astype(jnp.float32)   # valid for dx = 1
    m_dy = (row_i < POOL_H - 1).astype(jnp.float32)   # valid for dy = 1
    m_dxdy = m_dx * m_dy

    # ---- residual blocks: conv(2x2, no bias) -> BN(batch stats) -> relu -> +x
    # TODO(synk): original ResBlock uses nn.Conv2d(kernel_size=2, paddng=1)
    # (typo; the resulting shape would break `out + x`); we implement a
    # shape-preserving 2x2 conv with (0,1)/(0,1) zero padding instead.
    def block_body(blk, feat):
        # Tap shifts on the XLU (sublane rotate) + edge masks; out[r] = in[r+d].
        x01 = pltpu.roll(feat, shift=N - 1, axis=0) * m_dx            # (0,1)
        x10 = pltpu.roll(feat, shift=N - POOL_W, axis=0) * m_dy       # (1,0)
        x11 = pltpu.roll(feat, shift=N - POOL_W - 1, axis=0) * m_dxdy  # (1,1)
        # Fused [N, 4C] x [4C, C] matmul (bf16 operands, f32 accumulate).
        im2col = jnp.concatenate([feat, x01, x10, x11],
                                 axis=1).astype(jnp.bfloat16)          # [N,4C]
        conv = jnp.dot(im2col, wblk_ref[blk],
                       preferred_element_type=jnp.float32)             # [N,C]

        # BatchNorm2d (training mode): one-pass batch stats (var clamped >= 0),
        # affine folded into a single scale/shift pair per channel.
        s1 = jnp.sum(conv, axis=0, keepdims=True)                 # [1, C]
        s2 = jnp.sum(conv * conv, axis=0, keepdims=True)          # [1, C]
        mean = s1 * inv_n
        var = jnp.maximum(s2 * inv_n - mean * mean, 0.0)
        scale = gamma_ref[blk] * lax.rsqrt(var + BN_EPS)          # [1, C]
        shift = beta_ref[blk] - mean * scale                      # [1, C]
        return jnp.maximum(conv * scale + shift, 0.0) + feat

    feat = lax.fori_loop(0, num_blocks, block_body, feat, unroll=True)
    o_ref[...] = feat.astype(o_ref.dtype)


def mlp_kernel(x_ref, w1_ref, b1_ref, w2_ref, b2_ref, o_ref):
    """fc1 + relu + fc2 (x is the NHWC-flattened feature map, bf16).

    Hidden (32) and output (10) widths are zero-padded to 128 lanes so both
    matmuls and the final store are lane-dense; XLA slices [:, :10] outside.
    """
    h = jnp.dot(x_ref[...], w1_ref[...],
                preferred_element_type=jnp.float32) + b1_ref[...]
    h = jnp.maximum(h, 0.0).astype(jnp.bfloat16)
    o_ref[...] = jnp.dot(h, w2_ref[...],
                         preferred_element_type=jnp.float32) + b2_ref[...]


# --------------------------------------------------------------------------
# plain-JAX glue: input im2col (runs once on the raw network input)
# --------------------------------------------------------------------------
def _im2col(x_nhwc, kh, kw, pad):
    """x_nhwc: [B,H,W,C] -> patches [B,Ho,Wo, kh*kw*C] (kh, kw, cin ordering)."""
    B, H, W, C = x_nhwc.shape
    xp = jnp.pad(x_nhwc, ((0, 0), pad[0], pad[1], (0, 0)))
    Ho = H + pad[0][0] + pad[0][1] - kh + 1
    Wo = W + pad[1][0] + pad[1][1] - kw + 1
    cols = []
    for i in range(kh):
        for j in range(kw):
            cols.append(xp[:, i:i + Ho, j:j + Wo, :])
    patches = jnp.stack(cols, axis=-2)              # [B,Ho,Wo,kh*kw,C]
    return patches.reshape(B, Ho, Wo, kh * kw * C)


# --------------------------------------------------------------------------
# ResNet module (deterministic synthetic parameters)
# --------------------------------------------------------------------------
class PallasResNet:
    def __init__(self, blocks: int, channels: int, key):
        C = channels
        self.channels = C
        self.num_blocks = blocks
        keys = jax.random.split(key, 4 + blocks)

        # conv1: torch weight [C,3,3,3] -> matmul weight [27,C], zero-padded
        # along the reduction dim (27 -> 32), stored bf16 for the MXU.
        w1_t = jax.random.normal(keys[0], (C, 3, 3, 3), jnp.float32) * (2.0 / 27.0) ** 0.5
        w1 = jnp.transpose(w1_t, (2, 3, 1, 0)).reshape(K_CONV1, C)
        self.w_conv1 = jnp.pad(w1, ((0, K_PAD - K_CONV1), (0, 0))).astype(jnp.bfloat16)
        self.b_conv1 = 0.01 * jax.random.normal(keys[1], (1, C), jnp.float32)

        # resblocks: torch [C,C,2,2] (kaiming_normal, relu) -> taps stacked
        # row-major as [4*C, C] so the kernel does a single [N,4C]x[4C,C]
        # matmul per block. Shipped as one bf16 [blocks, 4C, C] tensor.
        wbs, gammas, betas = [], [], []
        for b in range(blocks):
            wt = jax.random.normal(keys[4 + b], (C, C, 2, 2), jnp.float32) * (2.0 / (4.0 * C)) ** 0.5
            wbs.append(jnp.transpose(wt, (2, 3, 1, 0)).reshape(4 * C, C))
            gammas.append(jnp.ones((1, C), jnp.float32))   # BN weight (ones)
            betas.append(jnp.zeros((1, C), jnp.float32))   # BN bias (zeros)
        self.w_blocks = jnp.stack(wbs, axis=0).astype(jnp.bfloat16)  # [blocks,4C,C]
        self.gammas = jnp.stack(gammas, axis=0)                      # [blocks,1,C]
        self.betas = jnp.stack(betas, axis=0)                        # [blocks,1,C]

        # fc1: torch consumes the NCHW flatten (row index = c*64 + s). Rows
        # are permuted ONCE at init to NHWC order (s*C + c) so the hot path
        # needs no transpose before the MLP kernel. Hidden width padded to
        # 128 lanes; weights stored bf16.
        w_fc1_nchw = 0.02 * jax.random.normal(
            keys[2], (POOL_H * POOL_W * C, 32), jnp.float32)
        w_fc1 = (w_fc1_nchw.reshape(C, POOL_H * POOL_W, 32)
                 .transpose(1, 0, 2).reshape(POOL_H * POOL_W * C, 32))
        self.w_fc1 = jnp.pad(w_fc1, ((0, 0), (0, HID_PAD - 32))).astype(jnp.bfloat16)
        self.b_fc1 = jnp.zeros((1, HID_PAD), jnp.float32)
        w_fc2 = 0.02 * jax.random.normal(keys[3], (32, 10), jnp.float32)
        self.w_fc2 = jnp.pad(w_fc2, ((0, HID_PAD - 32),
                                     (0, OUT_PAD - 10))).astype(jnp.bfloat16)
        self.b_fc2 = jnp.zeros((1, OUT_PAD), jnp.float32)

        self._forward = jax.jit(self._forward_impl)

    def _forward_impl(self, x_nchw):
        B = x_nchw.shape[0]
        C = self.channels
        N = B * POOL_H * POOL_W

        # NCHW -> NHWC, conv1 im2col, grouped by 2x2 pool position (p-major
        # rows), zero-padded 27 -> 32 reduction features, cast to bf16.
        x = jnp.transpose(x_nchw, (0, 2, 3, 1)).astype(jnp.float32)  # [B,16,16,3]
        patches = _im2col(x, 3, 3, ((1, 1), (1, 1)))                 # [B,16,16,27]
        pooled = jnp.stack(
            [patches[:, pi::2, pj::2, :].reshape(N, K_CONV1)
             for pi in (0, 1) for pj in (0, 1)], axis=0)             # [4, N, 27]
        pooled = pooled.reshape(4 * N, K_CONV1)
        pooled = jnp.pad(pooled,
                         ((0, 0), (0, K_PAD - K_CONV1))).astype(jnp.bfloat16)

        # Kernel 1: conv1 + pool + all ResBlocks; feature slab stays in VMEM.
        feat = pl.pallas_call(
            fused_features_kernel,
            out_shape=jax.ShapeDtypeStruct((N, C), jnp.bfloat16),
        )(pooled, self.w_conv1, self.b_conv1,
          self.w_blocks, self.gammas, self.betas)

        # NHWC flatten: free row-major view (fc1 rows were pre-permuted).
        flat = feat.reshape(B, POOL_H * POOL_W * C)

        # Kernel 2: fc1 + relu + fc2 with 128-lane-dense output; slice in XLA.
        logits_pad = pl.pallas_call(
            mlp_kernel,
            out_shape=jax.ShapeDtypeStruct((B, OUT_PAD), jnp.float32),
        )(flat, self.w_fc1, self.b_fc1, self.w_fc2, self.b_fc2)
        return logits_pad[:, :10]

    def __call__(self, x_nchw):
        return self._forward(x_nchw)


# --------------------------------------------------------------------------
if __name__ == "__main__":
    key = jax.random.PRNGKey(0)
    k_x, k_params = jax.random.split(key)

    BATCH, CHANNELS, BLOCKS = 2, 8, 2
    # fc1 expects 8*8*channels features => input spatial 16x16 (pooled by 2).
    x = jax.random.normal(k_x, (BATCH, 3, 16, 16), jnp.float32)

    model = PallasResNet(blocks=BLOCKS, channels=CHANNELS, key=k_params)
    out = model(x)
    out = jax.block_until_ready(out)
    assert out.shape == (BATCH, 10) and out.dtype == jnp.float32
    print("KERNEL_OK")
</pallas_src>

<mosaic_0001>
module attributes {stable_mosaic.version = 11 : i64} {
  func.func @fused_features_kernel(%arg0: memref<512x32xbf16, #tpu.memory_space<vmem>>, %arg1: memref<32x8xbf16, #tpu.memory_space<vmem>>, %arg2: memref<1x8xf32, #tpu.memory_space<vmem>>, %arg3: memref<2x32x8xbf16, #tpu.memory_space<vmem>>, %arg4: memref<2x1x8xf32, #tpu.memory_space<vmem>>, %arg5: memref<2x1x8xf32, #tpu.memory_space<vmem>>, %arg6: memref<128x8xbf16, #tpu.memory_space<vmem>>) attributes {dimension_semantics = [], scalar_prefetch = 0 : i64, scratch_operands = 0 : i64, tpu.core_type = #tpu.core_type<tc>} {
    %c0 = arith.constant 0 : index
    %c0_0 = arith.constant 0 : index
    %0 = vector.load %arg0[%c0, %c0_0] : memref<512x32xbf16, #tpu.memory_space<vmem>>, vector<512x32xbf16>
    %c0_1 = arith.constant 0 : index
    %c0_2 = arith.constant 0 : index
    %1 = vector.load %arg1[%c0_1, %c0_2] : memref<32x8xbf16, #tpu.memory_space<vmem>>, vector<32x8xbf16>
    %cst = arith.constant dense<0.000000e+00> : vector<512x8xf32>
    %2 = tpu.matmul %0, %1, %cst {dimension_numbers = #tpu.dot_dimension_numbers<[1], [0], [0], [1], [0, 0, 1, 1], [], []>} : vector<512x32xbf16>, vector<32x8xbf16>, vector<512x8xf32> -> vector<512x8xf32>
    %3 = vector.extract_strided_slice %2 {offsets = [0, 0], sizes = [128, 8], strides = [1, 1]} : vector<512x8xf32> to vector<128x8xf32>
    %4 = vector.extract_strided_slice %2 {offsets = [128, 0], sizes = [128, 8], strides = [1, 1]} : vector<512x8xf32> to vector<128x8xf32>
    %5 = arith.maximumf %3, %4 : vector<128x8xf32>
    %6 = vector.extract_strided_slice %2 {offsets = [256, 0], sizes = [128, 8], strides = [1, 1]} : vector<512x8xf32> to vector<128x8xf32>
    %7 = vector.extract_strided_slice %2 {offsets = [384, 0], sizes = [128, 8], strides = [1, 1]} : vector<512x8xf32> to vector<128x8xf32>
    %8 = arith.maximumf %6, %7 : vector<128x8xf32>
    %9 = arith.maximumf %5, %8 : vector<128x8xf32>
    %c0_3 = arith.constant 0 : index
    %c0_4 = arith.constant 0 : index
    %10 = vector.load %arg2[%c0_3, %c0_4] : memref<1x8xf32, #tpu.memory_space<vmem>>, vector<1x8xf32>
    %11 = vector.broadcast %10 : vector<1x8xf32> to vector<128x8xf32>
    %12 = arith.addf %9, %11 : vector<128x8xf32>
    %cst_5 = arith.constant 0.000000e+00 : f32
    %13 = vector.broadcast %cst_5 : f32 to vector<128x8xf32>
    %14 = arith.maximumf %12, %13 : vector<128x8xf32>
    %15 = tpu.iota {dimensions = array<i32: 0>} : vector<128x8xi32>
    %c7_i32 = arith.constant 7 : i32
    %16 = vector.broadcast %c7_i32 : i32 to vector<128x8xi32>
    %17 = arith.andi %15, %16 : vector<128x8xi32>
    %c3_i32 = arith.constant 3 : i32
    %18 = vector.broadcast %c3_i32 : i32 to vector<128x8xi32>
    %19 = arith.shrsi %15, %18 : vector<128x8xi32>
    %c7_i32_6 = arith.constant 7 : i32
    %20 = vector.broadcast %c7_i32_6 : i32 to vector<128x8xi32>
    %21 = arith.andi %19, %20 : vector<128x8xi32>
    %c7_i32_7 = arith.constant 7 : i32
    %22 = vector.broadcast %c7_i32_7 : i32 to vector<128x8xi32>
    %23 = arith.cmpi slt, %17, %22 : vector<128x8xi32>
    %24 = arith.extui %23 : vector<128x8xi1> to vector<128x8xi32>
    %25 = arith.sitofp %24 : vector<128x8xi32> to vector<128x8xf32>
    %c7_i32_8 = arith.constant 7 : i32
    %26 = vector.broadcast %c7_i32_8 : i32 to vector<128x8xi32>
    %27 = arith.cmpi slt, %21, %26 : vector<128x8xi32>
    %28 = arith.extui %27 : vector<128x8xi1> to vector<128x8xi32>
    %29 = arith.sitofp %28 : vector<128x8xi32> to vector<128x8xf32>
    %30 = arith.mulf %25, %29 : vector<128x8xf32>
    %c0_i32 = arith.constant 0 : i32
    %c127_i32 = arith.constant 127 : i32
    %31 = tpu.dynamic_rotate %14 by %c127_i32 dim 0 : vector<128x8xf32>, i32 -> vector<128x8xf32>
    %32 = arith.mulf %31, %25 : vector<128x8xf32>
    %c120_i32 = arith.constant 120 : i32
    %33 = tpu.dynamic_rotate %14 by %c120_i32 dim 0 : vector<128x8xf32>, i32 -> vector<128x8xf32>
    %34 = arith.mulf %33, %29 : vector<128x8xf32>
    %c119_i32 = arith.constant 119 : i32
    %35 = tpu.dynamic_rotate %14 by %c119_i32 dim 0 : vector<128x8xf32>, i32 -> vector<128x8xf32>
    %36 = arith.mulf %35, %30 : vector<128x8xf32>
    %37 = tpu.concatenate %14, %32, %34, %36 in 1 : vector<128x8xf32>, vector<128x8xf32>, vector<128x8xf32>, vector<128x8xf32> -> vector<128x32xf32>
    %38 = arith.truncf %37 : vector<128x32xf32> to vector<128x32xbf16>
    %39 = arith.index_cast %c0_i32 : i32 to index
    %c0_9 = arith.constant 0 : index
    %c0_10 = arith.constant 0 : index
    %40 = vector.load %arg3[%39, %c0_9, %c0_10] : memref<2x32x8xbf16, #tpu.memory_space<vmem>>, vector<1x32x8xbf16>
    %41 = vector.shape_cast %40 : vector<1x32x8xbf16> to vector<32x8xbf16>
    %cst_11 = arith.constant dense<0.000000e+00> : vector<128x8xf32>
    %42 = tpu.matmul %38, %41, %cst_11 {dimension_numbers = #tpu.dot_dimension_numbers<[1], [0], [0], [1], [0, 0, 1, 1], [], []>} : vector<128x32xbf16>, vector<32x8xbf16>, vector<128x8xf32> -> vector<128x8xf32>
    %cst_12 = arith.constant dense<0.000000e+00> : vector<8xf32>
    %43 = vector.multi_reduction <add>, %42, %cst_12 [0] : vector<128x8xf32> to vector<8xf32>
    %44 = vector.shape_cast %43 : vector<8xf32> to vector<1x8xf32>
    %45 = arith.mulf %42, %42 : vector<128x8xf32>
    %cst_13 = arith.constant dense<0.000000e+00> : vector<8xf32>
    %46 = vector.multi_reduction <add>, %45, %cst_13 [0] : vector<128x8xf32> to vector<8xf32>
    %47 = vector.shape_cast %46 : vector<8xf32> to vector<1x8xf32>
    %cst_14 = arith.constant 7.812500e-03 : f32
    %48 = vector.broadcast %cst_14 : f32 to vector<1x8xf32>
    %49 = arith.mulf %44, %48 : vector<1x8xf32>
    %cst_15 = arith.constant 7.812500e-03 : f32
    %50 = vector.broadcast %cst_15 : f32 to vector<1x8xf32>
    %51 = arith.mulf %47, %50 : vector<1x8xf32>
    %52 = arith.mulf %49, %49 : vector<1x8xf32>
    %53 = arith.subf %51, %52 : vector<1x8xf32>
    %cst_16 = arith.constant 0.000000e+00 : f32
    %54 = vector.broadcast %cst_16 : f32 to vector<1x8xf32>
    %55 = arith.maximumf %53, %54 : vector<1x8xf32>
    %56 = arith.index_cast %c0_i32 : i32 to index
    %c0_17 = arith.constant 0 : index
    %c0_18 = arith.constant 0 : index
    %57 = vector.load %arg4[%56, %c0_17, %c0_18] : memref<2x1x8xf32, #tpu.memory_space<vmem>>, vector<1x1x8xf32>
    %58 = vector.shape_cast %57 : vector<1x1x8xf32> to vector<1x8xf32>
    %cst_19 = arith.constant 9.99999974E-6 : f32
    %59 = vector.broadcast %cst_19 : f32 to vector<1x8xf32>
    %60 = arith.addf %55, %59 : vector<1x8xf32>
    %61 = math.rsqrt %60 : vector<1x8xf32>
    %62 = arith.mulf %58, %61 : vector<1x8xf32>
    %63 = arith.index_cast %c0_i32 : i32 to index
    %c0_20 = arith.constant 0 : index
    %c0_21 = arith.constant 0 : index
    %64 = vector.load %arg5[%63, %c0_20, %c0_21] : memref<2x1x8xf32, #tpu.memory_space<vmem>>, vector<1x1x8xf32>
    %65 = vector.shape_cast %64 : vector<1x1x8xf32> to vector<1x8xf32>
    %66 = arith.mulf %49, %62 : vector<1x8xf32>
    %67 = arith.subf %65, %66 : vector<1x8xf32>
    %68 = vector.broadcast %62 : vector<1x8xf32> to vector<128x8xf32>
    %69 = arith.mulf %42, %68 : vector<128x8xf32>
    %70 = vector.broadcast %67 : vector<1x8xf32> to vector<128x8xf32>
    %71 = arith.addf %69, %70 : vector<128x8xf32>
    %cst_22 = arith.constant 0.000000e+00 : f32
    %72 = vector.broadcast %cst_22 : f32 to vector<128x8xf32>
    %73 = arith.maximumf %71, %72 : vector<128x8xf32>
    %74 = arith.addf %73, %14 : vector<128x8xf32>
    %c1_i32 = arith.constant 1 : i32
    %c127_i32_23 = arith.constant 127 : i32
    %75 = tpu.dynamic_rotate %74 by %c127_i32_23 dim 0 : vector<128x8xf32>, i32 -> vector<128x8xf32>
    %76 = arith.mulf %75, %25 : vector<128x8xf32>
    %c120_i32_24 = arith.constant 120 : i32
    %77 = tpu.dynamic_rotate %74 by %c120_i32_24 dim 0 : vector<128x8xf32>, i32 -> vector<128x8xf32>
    %78 = arith.mulf %77, %29 : vector<128x8xf32>
    %c119_i32_25 = arith.constant 119 : i32
    %79 = tpu.dynamic_rotate %74 by %c119_i32_25 dim 0 : vector<128x8xf32>, i32 -> vector<128x8xf32>
    %80 = arith.mulf %79, %30 : vector<128x8xf32>
    %81 = tpu.concatenate %74, %76, %78, %80 in 1 : vector<128x8xf32>, vector<128x8xf32>, vector<128x8xf32>, vector<128x8xf32> -> vector<128x32xf32>
    %82 = arith.truncf %81 : vector<128x32xf32> to vector<128x32xbf16>
    %83 = arith.index_cast %c1_i32 : i32 to index
    %c0_26 = arith.constant 0 : index
    %c0_27 = arith.constant 0 : index
    %84 = vector.load %arg3[%83, %c0_26, %c0_27] : memref<2x32x8xbf16, #tpu.memory_space<vmem>>, vector<1x32x8xbf16>
    %85 = vector.shape_cast %84 : vector<1x32x8xbf16> to vector<32x8xbf16>
    %cst_28 = arith.constant dense<0.000000e+00> : vector<128x8xf32>
    %86 = tpu.matmul %82, %85, %cst_28 {dimension_numbers = #tpu.dot_dimension_numbers<[1], [0], [0], [1], [0, 0, 1, 1], [], []>} : vector<128x32xbf16>, vector<32x8xbf16>, vector<128x8xf32> -> vector<128x8xf32>
    %cst_29 = arith.constant dense<0.000000e+00> : vector<8xf32>
    %87 = vector.multi_reduction <add>, %86, %cst_29 [0] : vector<128x8xf32> to vector<8xf32>
    %88 = vector.shape_cast %87 : vector<8xf32> to vector<1x8xf32>
    %89 = arith.mulf %86, %86 : vector<128x8xf32>
    %cst_30 = arith.constant dense<0.000000e+00> : vector<8xf32>
    %90 = vector.multi_reduction <add>, %89, %cst_30 [0] : vector<128x8xf32> to vector<8xf32>
    %91 = vector.shape_cast %90 : vector<8xf32> to vector<1x8xf32>
    %cst_31 = arith.constant 7.812500e-03 : f32
    %92 = vector.broadcast %cst_31 : f32 to vector<1x8xf32>
    %93 = arith.mulf %88, %92 : vector<1x8xf32>
    %cst_32 = arith.constant 7.812500e-03 : f32
    %94 = vector.broadcast %cst_32 : f32 to vector<1x8xf32>
    %95 = arith.mulf %91, %94 : vector<1x8xf32>
    %96 = arith.mulf %93, %93 : vector<1x8xf32>
    %97 = arith.subf %95, %96 : vector<1x8xf32>
    %cst_33 = arith.constant 0.000000e+00 : f32
    %98 = vector.broadcast %cst_33 : f32 to vector<1x8xf32>
    %99 = arith.maximumf %97, %98 : vector<1x8xf32>
    %100 = arith.index_cast %c1_i32 : i32 to index
    %c0_34 = arith.constant 0 : index
    %c0_35 = arith.constant 0 : index
    %101 = vector.load %arg4[%100, %c0_34, %c0_35] : memref<2x1x8xf32, #tpu.memory_space<vmem>>, vector<1x1x8xf32>
    %102 = vector.shape_cast %101 : vector<1x1x8xf32> to vector<1x8xf32>
    %cst_36 = arith.constant 9.99999974E-6 : f32
    %103 = vector.broadcast %cst_36 : f32 to vector<1x8xf32>
    %104 = arith.addf %99, %103 : vector<1x8xf32>
    %105 = math.rsqrt %104 : vector<1x8xf32>
    %106 = arith.mulf %102, %105 : vector<1x8xf32>
    %107 = arith.index_cast %c1_i32 : i32 to index
    %c0_37 = arith.constant 0 : index
    %c0_38 = arith.constant 0 : index
    %108 = vector.load %arg5[%107, %c0_37, %c0_38] : memref<2x1x8xf32, #tpu.memory_space<vmem>>, vector<1x1x8xf32>
    %109 = vector.shape_cast %108 : vector<1x1x8xf32> to vector<1x8xf32>
    %110 = arith.mulf %93, %106 : vector<1x8xf32>
    %111 = arith.subf %109, %110 : vector<1x8xf32>
    %112 = vector.broadcast %106 : vector<1x8xf32> to vector<128x8xf32>
    %113 = arith.mulf %86, %112 : vector<128x8xf32>
    %114 = vector.broadcast %111 : vector<1x8xf32> to vector<128x8xf32>
    %115 = arith.addf %113, %114 : vector<128x8xf32>
    %cst_39 = arith.constant 0.000000e+00 : f32
    %116 = vector.broadcast %cst_39 : f32 to vector<128x8xf32>
    %117 = arith.maximumf %115, %116 : vector<128x8xf32>
    %118 = arith.addf %117, %74 : vector<128x8xf32>
    %c2_i32 = arith.constant 2 : i32
    %119 = arith.truncf %118 : vector<128x8xf32> to vector<128x8xbf16>
    %c0_40 = arith.constant 0 : index
    %c0_41 = arith.constant 0 : index
    %120 = vector.load %arg6[%c0_40, %c0_41] : memref<128x8xbf16, #tpu.memory_space<vmem>>, vector<128x8xbf16>
    tpu.vector_store %arg6[%c0_40, %c0_41], %119 {strides = array<i32>} : memref<128x8xbf16, #tpu.memory_space<vmem>>, vector<128x8xbf16>,
    return
  }
}

module attributes {stable_mosaic.version = 11 : i64} {
  func.func @mlp_kernel(%arg0: memref<2x512xbf16, #tpu.memory_space<vmem>>, %arg1: memref<512x128xbf16, #tpu.memory_space<vmem>>, %arg2: memref<1x128xf32, #tpu.memory_space<vmem>>, %arg3: memref<128x128xbf16, #tpu.memory_space<vmem>>, %arg4: memref<1x128xf32, #tpu.memory_space<vmem>>, %arg5: memref<2x128xf32, #tpu.memory_space<vmem>>) attributes {dimension_semantics = [], scalar_prefetch = 0 : i64, scratch_operands = 0 : i64, tpu.core_type = #tpu.core_type<tc>} {
    %c0 = arith.constant 0 : index
    %c0_0 = arith.constant 0 : index
    %0 = vector.load %arg0[%c0, %c0_0] : memref<2x512xbf16, #tpu.memory_space<vmem>>, vector<2x512xbf16>
    %c0_1 = arith.constant 0 : index
    %c0_2 = arith.constant 0 : index
    %1 = vector.load %arg1[%c0_1, %c0_2] : memref<512x128xbf16, #tpu.memory_space<vmem>>, vector<512x128xbf16>
    %cst = arith.constant dense<0.000000e+00> : vector<2x128xf32>
    %2 = tpu.matmul %0, %1, %cst {dimension_numbers = #tpu.dot_dimension_numbers<[1], [0], [0], [1], [0, 0, 1, 1], [], []>} : vector<2x512xbf16>, vector<512x128xbf16>, vector<2x128xf32> -> vector<2x128xf32>
    %c0_3 = arith.constant 0 : index
    %c0_4 = arith.constant 0 : index
    %3 = vector.load %arg2[%c0_3, %c0_4] : memref<1x128xf32, #tpu.memory_space<vmem>>, vector<1x128xf32>
    %4 = vector.broadcast %3 : vector<1x128xf32> to vector<2x128xf32>
    %5 = arith.addf %2, %4 : vector<2x128xf32>
    %cst_5 = arith.constant 0.000000e+00 : f32
    %6 = vector.broadcast %cst_5 : f32 to vector<2x128xf32>
    %7 = arith.maximumf %5, %6 : vector<2x128xf32>
    %8 = arith.truncf %7 : vector<2x128xf32> to vector<2x128xbf16>
    %c0_6 = arith.constant 0 : index
    %c0_7 = arith.constant 0 : index
    %9 = vector.load %arg3[%c0_6, %c0_7] : memref<128x128xbf16, #tpu.memory_space<vmem>>, vector<128x128xbf16>
    %cst_8 = arith.constant dense<0.000000e+00> : vector<2x128xf32>
    %10 = tpu.matmul %8, %9, %cst_8 {dimension_numbers = #tpu.dot_dimension_numbers<[1], [0], [0], [1], [0, 0, 1, 1], [], []>} : vector<2x128xbf16>, vector<128x128xbf16>, vector<2x128xf32> -> vector<2x128xf32>
    %c0_9 = arith.constant 0 : index
    %c0_10 = arith.constant 0 : index
    %11 = vector.load %arg4[%c0_9, %c0_10] : memref<1x128xf32, #tpu.memory_space<vmem>>, vector<1x128xf32>
    %12 = vector.broadcast %11 : vector<1x128xf32> to vector<2x128xf32>
    %13 = arith.addf %10, %12 : vector<2x128xf32>
    %c0_11 = arith.constant 0 : index
    %c0_12 = arith.constant 0 : index
    %14 = vector.load %arg5[%c0_11, %c0_12] : memref<2x128xf32, #tpu.memory_space<vmem>>, vector<2x128xf32>
    tpu.vector_store %arg5[%c0_11, %c0_12], %13 {strides = array<i32>} : memref<2x128xf32, #tpu.memory_space<vmem>>, vector<2x128xf32>,
    return
  }
}

</mosaic_0001>

<bundles_post_ra>
// kernel: _forward_impl.3
= control target key start
LH: loop header
LB: loop body
LE: loop exit
PB: predicated region body
PF: predicated region fallthrough
CT: control target
= control target key end

     0   :  { %v106_v30 = vlaneseq  ;;  %v707_v34 = vmov 1966171168   ;;  %v708_v37 = vmov 0.0   ;;  %s882_s0 = inlined_call_operand.vmem [shape: bf16[2,512], index: 0, kind: input, shape index: {}]   ;;  %s883_s1 = inlined_call_operand.vmem [shape: bf16[512,128], index: 1, kind: input, shape index: {}]   ;;  %s884_s2 = inlined_call_operand.vmem [shape: f32[1,128], index: 2, kind: input, shape index: {}, may-alias: {2,4}]   ;;  %s885_s3 = inlined_call_operand.vmem [shape: bf16[128,128], index: 3, kind: input, shape index: {}]   ;;  %s886_s4 = inlined_call_operand.vmem [shape: f32[1,128], index: 4, kind: input, shape index: {}, may-alias: {2,4}]   ;;  %s887_s5 = inlined_call_operand.hbm [shape: f32[2,128], index: 5, kind: output, shape index: {}]  }
   0x1   :  { %v643_v0 = vld [vmem:[%s883_s1 + $0x40] sm:$0xff]   ;;  %v647_v4 = vld [vmem:[%s883_s1 + $0x48] sm:$0xff]   ;;  %v651_v8 = vld [vmem:[%s883_s1 + $0x50] sm:$0xff]   ;;  %v104_v35 = vunpack.c.l.s4 %v707_v34 }
   0x2   :  { %v644_v1 = vld [vmem:[%s883_s1 + $0xc0] sm:$0xff]   ;;  %566 = vmatprep.subr.bf16.mxu0 %v643_v0  ;;  %v648_v5 = vld [vmem:[%s883_s1 + $0xc8] sm:$0xff]   ;;  %v652_v9 = vld [vmem:[%s883_s1 + $0xd0] sm:$0xff]   ;;  %v107_v36 = vshrl.u32 %v106_v30, 7 }
   0x3   :  { %v645_v2 = vld [vmem:[%s883_s1] sm:$0xff]   ;;  %588 = vmatprep.subr.bf16.mxu1 %v644_v1  ;;  %v649_v6 = vld [vmem:[%s883_s1 + $0x8] sm:$0xff]   ;;  %v653_v10 = vld [vmem:[%s883_s1 + $0x10] sm:$0xff]   ;;  %v105_v39 = vunpack.c.0.s8 %v104_v35 }
   0x4   :  { %v646_v3 = vld [vmem:[%s883_s1 + $0x80] sm:$0xff]   ;;  %567 = vmatpush3.bf16.msra.mxu0 %v645_v2  ;;  %v650_v7 = vld [vmem:[%s883_s1 + $0x88] sm:$0xff]   ;;  %v654_v11 = vld [vmem:[%s883_s1 + $0x90] sm:$0xff]  }
   0x5   :  { %589 = vmatpush3.bf16.msra.mxu1 %v646_v3  ;;  %568 = vmatprep.subr.bf16.mxu0 %v647_v4  ;;  %v655_v12 = vld [vmem:[%s883_s1 + $0x58] sm:$0xff]   ;;  %v659_v16 = vld [vmem:[%s883_s1 + $0x60] sm:$0xff]   ;;  %v663_v20 = vld [vmem:[%s883_s1 + $0x68] sm:$0xff]   ;;  %v108_v40 = vsub.s32 %v105_v39, %v107_v36 }
   0x6   :  { %590 = vmatprep.subr.bf16.mxu1 %v648_v5  ;;  %v656_v13 = vld [vmem:[%s883_s1 + $0xd8] sm:$0xff]   ;;  %v660_v17 = vld [vmem:[%s883_s1 + $0xe0] sm:$0xff]   ;;  %v664_v21 = vld [vmem:[%s883_s1 + $0xe8] sm:$0xff]  }
   0x7   :  { %v657_v14 = vld [vmem:[%s883_s1 + $0x18] sm:$0xff]   ;;  %v661_v18 = vld [vmem:[%s883_s1 + $0x20] sm:$0xff]   ;;  %v665_v22 = vld [vmem:[%s883_s1 + $0x28] sm:$0xff]  }
   0x8   :  { %569 = vmatpush3.bf16.msra.mxu0 %v649_v6  ;;  %v658_v15 = vld [vmem:[%s883_s1 + $0x98] sm:$0xff]   ;;  %v662_v19 = vld [vmem:[%s883_s1 + $0xa0] sm:$0xff]   ;;  %v666_v23 = vld [vmem:[%s883_s1 + $0xa8] sm:$0xff]  }
   0x9   :  { %591 = vmatpush3.bf16.msra.mxu1 %v650_v7  ;;  %570 = vmatprep.subr.bf16.mxu0 %v651_v8  ;;  %v667_v24 = vld [vmem:[%s883_s1 + $0x70] sm:$0xff]   ;;  %v671_v28 = vld [vmem:[%s883_s1 + $0x78] sm:$0xff]   ;;  %v524_v33 = vld.sshfl [vmem:[%s882_s0] sm:$0x33 pattern:$0x75316420] }
   0xa   :  { %592 = vmatprep.subr.bf16.mxu1 %v652_v9  ;;  %v668_v25 = vld [vmem:[%s883_s1 + $0xf0] sm:$0xff]   ;;  %v672_v29 = vld [vmem:[%s883_s1 + $0xf8] sm:$0xff]   ;;  %v102_v38 = vcombine.high %v524_v33, %v524_v33  ;;  %v675_v41 = vld [vmem:[%s885_s3] sm:$0xff]   ;;  %v109_v43 = vrot.slane %v524_v33, %v108_v40 }
   0xb   :  { %v669_v26 = vld [vmem:[%s883_s1 + $0x30] sm:$0xff]   ;;  %v673_v31 = vld [vmem:[%s883_s1 + $0x38] sm:$0xff]  }
   0xc   :  { %571 = vmatpush3.bf16.msra.mxu0 %v653_v10  ;;  %v670_v27 = vld [vmem:[%s883_s1 + $0xb0] sm:$0xff]   ;;  %v674_v32 = vld [vmem:[%s883_s1 + $0xb8] sm:$0xff]   ;;  %v116_v42 = vrot.slane %v102_v38, %v108_v40 }
   0xd   :  { %593 = vmatpush3.bf16.msra.mxu1 %v654_v11  ;;  %572 = vmatprep.subr.bf16.mxu0 %v655_v12 }
   0xe   :  { %594 = vmatprep.subr.bf16.mxu1 %v656_v13 }
  0x10   :  { %573 = vmatpush3.bf16.msra.mxu0 %v657_v14 }
  0x11   :  { %595 = vmatpush3.bf16.msra.mxu1 %v658_v15  ;;  %574 = vmatprep.subr.bf16.mxu0 %v659_v16 }
  0x12   :  { %596 = vmatprep.subr.bf16.mxu1 %v660_v17 }
  0x14   :  { %575 = vmatpush3.bf16.msra.mxu0 %v661_v18 }
  0x15   :  { %597 = vmatpush3.bf16.msra.mxu1 %v662_v19  ;;  %576 = vmatprep.subr.bf16.mxu0 %v663_v20 }
  0x16   :  { %598 = vmatprep.subr.bf16.mxu1 %v664_v21 }
  0x18   :  { %577 = vmatpush3.bf16.msra.mxu0 %v665_v22 }
  0x19   :  { %599 = vmatpush3.bf16.msra.mxu1 %v666_v23  ;;  %578 = vmatprep.subr.bf16.mxu0 %v667_v24 }
  0x1a   :  { %600 = vmatprep.subr.bf16.mxu1 %v668_v25 }
  0x1c   :  { %579 = vmatpush3.bf16.msra.mxu0 %v669_v26 }
  0x1d   :  { %601 = vmatpush3.bf16.msra.mxu1 %v670_v27  ;;  %580 = vmatprep.subr.bf16.mxu0 %v671_v28 }
  0x1e   :  { %602 = vmatprep.subr.bf16.mxu1 %v672_v29 }
  0x20   :  { %581 = vmatpush3.bf16.msra.mxu0 %v673_v31 }
  0x21   :  { %603 = vmatpush3.bf16.msra.mxu1 %v674_v32  ;;  %619 = vmatprep.subr.bf16.mxu0 %v708_v37 }
  0x22   :  { %10 = vsyncpa [#allocation3], 0  ;;  %347 = vmatprep.mubr.bf16.mxu0 %v116_v42  ;;  %v118_v44 = vcombine.high %v116_v42, %v116_v42  ;;  %v117_v45 = vcombine.high %v109_v43, %v109_v43  ;;  %v676_v46 = vld [vmem:[%s885_s3 + $0x8] sm:$0xff]   ;;  %v677_v47 = vld [vmem:[%s885_s3 + $0x10] sm:$0xff]   ;;  %vm709_vm0 = vmmov 0   ;;  %s710_s26 = smov [#allocation2]  }
  0x23   :  { %348 = vmatmul.mubr.bf16.vlgmr.msra.gmra.mrb[0].mxu0 %v109_v43  ;;  %v678_v48 = vld [vmem:[%s885_s3 + $0x18] sm:$0xff]   ;;  %v679_v49 = vld [vmem:[%s885_s3 + $0x20] sm:$0xff]   ;;  %v680_v50 = vld [vmem:[%s885_s3 + $0x28] sm:$0xff]  }
  0x24   :  { %387 = vmatprep.mubr.bf16.mxu1 %v118_v44  ;;  %620 = vmatpush3.bf16.msra.mxu0 %v675_v41  ;;  %v681_v51 = vld [vmem:[%s885_s3 + $0x30] sm:$0xff]   ;;  %v682_v52 = vld [vmem:[%s885_s3 + $0x38] sm:$0xff]   ;;  %v523_v54 = vld [vmem:[%s884_s2] ss:$0 sm:$0xff]  ;;  %s515_s2 = sshll.u32 %s710_s26, 4  ;;  %s516_s2 = int_to_ptr.vmem [resolvable:$true] %s515_s2 }
  0x25   :  { %388 = vmatmul.mubr.bf16.vlgmr.msra.gmra.mrb[0].mxu1 %v117_v45  ;;  %621 = vmatprep.subr.bf16.mxu0 %v708_v37  ;;  %v557_v4 = vld [vmem:[%s886_s4] ss:$0 sm:$0xff]  ;;  %s683_s27 = scalar_lea.vmem %s516_s2, 32  ;;  %p688_p1 = scmp.lt.s32.totalorder %s516_s2, %s516_s2 }
  0x26   :  { %635 = vmatprep.mubr.msk.bf16.mxu0 %vm709_vm0, %v708_v37  ;;  %p684_p0 = scmp.ne.s32.totalorder %s516_s2, %s683_s27  ;;  %p689_p2 = scmp.lt.s32.totalorder %s683_s27, %s683_s27 }
  0x28   :  { %622 = vmatpush3.bf16.msra.mxu0 %v676_v46  ;;  %p690_p3 = por %p689_p2, %p688_p1 }
  0x29   :  { %623 = vmatprep.subr.bf16.mxu0 %v708_v37 }
  0x2a   :  { %p691_p4 = pnand %p690_p3, %p684_p0 }
  0x2c   :  { %624 = vmatpush3.bf16.msra.mxu0 %v677_v47 }
  0x2d   :  { %625 = vmatprep.subr.bf16.mxu0 %v708_v37 }
  0x30   :  { %626 = vmatpush3.bf16.msra.mxu0 %v678_v48 }
  0x31   :  { %627 = vmatprep.subr.bf16.mxu0 %v708_v37 }
  0x34   :  { %628 = vmatpush3.bf16.msra.mxu0 %v679_v49 }
  0x35   :  { %629 = vmatprep.subr.bf16.mxu0 %v708_v37 }
  0x38   :  { %630 = vmatpush3.bf16.msra.mxu0 %v680_v50 }
  0x39   :  { %631 = vmatprep.subr.bf16.mxu0 %v708_v37 }
  0x3c   :  { %632 = vmatpush3.bf16.msra.mxu0 %v681_v51 }
  0x3d   :  { %633 = vmatprep.subr.bf16.mxu0 %v708_v37 }
  0x40   :  { %634 = vmatpush3.bf16.msra.mxu0 %v682_v52 }
  0xf6   :  { %v582_v53 = vpop.f32.mrb[0].mxu0 }
  0xf7   :  { %v583_v55 = vpop.f32.mrb[1].mxu0 }
  0xf8   :  { %v604_v56 = vpop.f32.mrb[0].mxu1  ;;  %v584_v57 = vadd.f32 %v583_v55, %v582_v53  ;;  %v585_v58 = vpop.f32.mrb[2].mxu0 }
  0xf9   :  { %v605_v59 = vpop.f32.mrb[1].mxu1  ;;  %v586_v60 = vpop.f32.mrb[3].mxu0 }
  0xfa   :  { %v350_v61 = vadd.f32 %v584_v57, %v523_v54  ;;  %v606_v62 = vadd.f32 %v605_v59, %v604_v56  ;;  %v607_v63 = vpop.f32.mrb[2].mxu1 }
  0xfb   :  { %v608_v0 = vpop.f32.mrb[3].mxu1 }
  0xfc   :  { %v390_v1 = vadd.f32 %v606_v62, %v350_v61 }
  0xfe   :  { %v395_v2 = vmax.f32 %v390_v1, 0.0 }
 0x100   :  { %v396_v3 = vpack.c.bf16 %v395_v2, %v395_v2 }
 0x102   :  { %636 = vmatmul.mubr.bf16.vlgmr.msra.gmra.mrb[4].mxu0 %v396_v3 }
 0x1d5   :  { %v502_v5 = vpop.f32.mrb[4].mxu0 }
 0x1d6   :  { %v503_v6 = vadd.f32 %v557_v4, %v502_v5  ;;  %v637_v7 = vpop.f32.mrb[5].mxu0 }
 0x1d7   :  { %v505_v8 = vpop.f32.mrb[6].mxu0 }
 0x1d8   :  { %508 = vst [vmem:[#allocation2] sm:$0x3] %v503_v6  ;;  %v638_v9 = vpop.f32.mrb[7].mxu0 }
 0x1d9   :  { %694 = shalt.err (!%p691_p4)
}
 0x1da   :  { %s695_s4 = scalar_lea.hbm %s887_s5, 32 }
 0x1db   :  { %p696_p5 = scmp.ne.s32.totalorder %s887_s5, %s695_s4  ;;  %p699_p6 = scmp.lt.u32.totalorder %s695_s4, %s887_s5 }
 0x1dd   :  { %p701_p7 = pnand %p699_p6, %p696_p5 }
 0x1df   :  { %704 = shalt.err (!%p701_p7)
}
 0x1e0   :  { %518 = dma.vmem_to_hbm [thread:$0]  %s516_s2, 32, %s887_s5, [#allocation3]  }
 0x1e1   :  { %705 = dma.done.wait [#allocation3], 32  }
 0x1e2   :  { %706 = vsyncadd [#allocation3], 4294967264 }
 0x1e3   :  { %522 = vsyncpa [#allocation3], 1 }

// kernel: _forward_impl.2
= control target key start
LH: loop header
LB: loop body
LE: loop exit
PB: predicated region body
PF: predicated region fallthrough
CT: control target
= control target key end

     0   :  { %vm264_vm0 = vcmask 261120   ;;  %v737_v56 = vlaneseq  ;;  %s2902_s18 = smov 16   ;;  %s2903_s19 = smov 8   ;;  %s4482_s1 = inlined_call_operand.vmem [shape: bf16[32,8], index: 1, kind: input, shape index: {}]   ;;  %s4483_s0 = inlined_call_operand.vmem [shape: bf16[512,32], index: 0, kind: input, shape index: {}]   ;;  %s4484_s3 = inlined_call_operand.vmem [shape: bf16[2,32,8], index: 3, kind: input, shape index: {}]   ;;  %s4485_s2 = inlined_call_operand.vmem [shape: f32[1,8], index: 2, kind: input, shape index: {}]   ;;  %s4486_s4 = inlined_call_operand.vmem [shape: f32[2,1,8], index: 4, kind: input, shape index: {}]   ;;  %s4487_s5 = inlined_call_operand.vmem [shape: f32[2,1,8], index: 5, kind: input, shape index: {}]   ;;  %s4488_s6 = inlined_call_operand.vmem [shape: bf16[128,8], index: 6, kind: output, shape index: {}]  }
   0x1   :  { %v2859_v0 = vld [vmem:[%s4482_s1] sm:$0xff]   ;;  %v2860_v1 = vld [vmem:[%s4482_s1 + $0x8] sm:$0xff]   ;;  %v2863_v4 = vld [vmem:[%s4483_s0 + $0x10] sm:$0xff]   ;;  %s2904_s20 = smov 24  }
   0x2   :  { %2503 = vmatprep.subr.bf16.mxu0 %v2859_v0  ;;  %v2861_v2 = vld [vmem:[%s4483_s0] sm:$0xff]   ;;  %2611 = vmatprep.subr.bf16.mxu1 %v2859_v0  ;;  %v2862_v3 = vld [vmem:[%s4483_s0 + $0x8] sm:$0xff]   ;;  %v2864_v5 = vld [vmem:[%s4483_s0 + $0x18] sm:$0xff]   ;;  %v3129_v62 = vshrl.u32 %v737_v56, 7 }
   0x3   :  { %2504 = vmatpush3.bf16.msra.mxu0 %v2859_v0  ;;  %2613 = vmatpush3.bf16.msra.mxu1 %v2859_v0  ;;  %v2865_v6 = vld [vmem:[%s4483_s0 + $0x20] sm:$0xff]   ;;  %v2878_v8 = vld [vmem:[%s4483_s0 + $0xc8] sm:$0xff]   ;;  %v2881_v10 = vld [vmem:[%s4483_s0 + $0xd0] sm:$0xff]  }
   0x4   :  { %2505 = vmatprep.subr.bf16.mxu0 %v2860_v1  ;;  %2507 = vmatprep.mubr.msk.bf16.mxu0 %vm264_vm0, %v2861_v2  ;;  %v2877_v7 = vld [vmem:[%s4483_s0 + $0xc0] sm:$0xff]   ;;  %v2866_v9 = vld [vmem:[%s4483_s0 + $0x28] sm:$0xff]   ;;  %v2867_v11 = vld [vmem:[%s4483_s0 + $0x30] sm:$0xff]   ;;  %v739_v2 = vadd.s32 8, %v3129_v62 }
   0x5   :  { %2612 = vmatprep.subr.bf16.mxu1 %v2860_v1  ;;  %2555 = vmatprep.mubr.msk.bf16.mxu1 %vm264_vm0, %v2877_v7  ;;  %v2882_v12 = vld [vmem:[%s4483_s0 + $0xd8] sm:$0xff]   ;;  %v2885_v13 = vld [vmem:[%s4483_s0 + $0xe0] sm:$0xff]   ;;  %v2887_v16 = vld [vmem:[%s4483_s0 + $0xe8] sm:$0xff]  }
   0x6   :  { %v2868_v14 = vld [vmem:[%s4483_s0 + $0x38] sm:$0xff]   ;;  %v2869_v15 = vld [vmem:[%s4483_s0 + $0x40] sm:$0xff]   ;;  %v2890_v17 = vld [vmem:[%s4483_s0 + $0xf0] sm:$0xff]  }
   0x7   :  { %2506 = vmatpush3.bf16.msra.mxu0 %v2860_v1  ;;  %2614 = vmatpush3.bf16.msra.mxu1 %v2860_v1  ;;  %v2870_v18 = vld [vmem:[%s4483_s0 + $0x48] sm:$0xff]   ;;  %v2871_v19 = vld [vmem:[%s4483_s0 + $0x50] sm:$0xff]   ;;  %v2892_v20 = vld [vmem:[%s4483_s0 + $0xf8] sm:$0xff]  }
   0x8   :  { %v2872_v21 = vld [vmem:[%s4483_s0 + $0x58] sm:$0xff]   ;;  %v2873_v22 = vld [vmem:[%s4483_s0 + $0x60] sm:$0xff]   ;;  %v2874_v23 = vld [vmem:[%s4483_s0 + $0x68] sm:$0xff]  }
   0x9   :  { %v2875_v24 = vld [vmem:[%s4483_s0 + $0x70] sm:$0xff]   ;;  %v2876_v25 = vld [vmem:[%s4483_s0 + $0x78] sm:$0xff]   ;;  %v2879_v26 = vld [vmem:[%s4483_s0 + $0x80] sm:$0xff]  }
   0xa   :  { %2508 = vmatmul.mubr.msk.bf16.vlgmr.msra.gmra.mrb[0].mxu0 %vm264_vm0, %v2862_v3  ;;  %2556 = vmatmul.mubr.msk.bf16.vlgmr.msra.gmra.mrb[0].mxu1 %vm264_vm0, %v2878_v8  ;;  %v2880_v27 = vld [vmem:[%s4483_s0 + $0x88] sm:$0xff]   ;;  %v2883_v28 = vld [vmem:[%s4483_s0 + $0x90] sm:$0xff]   ;;  %v2884_v29 = vld [vmem:[%s4483_s0 + $0x98] sm:$0xff]   ;;  %v745_v3 = vadd.s32 56, %v3129_v62 }
   0xb   :  { %2511 = vmatprep.mubr.msk.bf16.mxu0 %vm264_vm0, %v2863_v4  ;;  %2559 = vmatprep.mubr.msk.bf16.mxu1 %vm264_vm0, %v2881_v10  ;;  %v2886_v30 = vld [vmem:[%s4483_s0 + $0xa0] sm:$0xff]   ;;  %v2888_v31 = vld [vmem:[%s4483_s0 + $0xa8] sm:$0xff]   ;;  %v2889_v32 = vld [vmem:[%s4483_s0 + $0xb0] sm:$0xff]  }
   0xc   :  { %v2891_v33 = vld [vmem:[%s4483_s0 + $0xb8] sm:$0xff]   ;;  %v2893_v37 = vld [vmem:[%s4484_s3] sm:$0xff]  }
   0xd   :  { %2571 = vmatprep.subr.bf16.mxu1 %v2893_v37 }
   0xe   :  { %2572 = vmatpush3.bf16.msra.mxu1 %v2893_v37 }
  0x12   :  { %2512 = vmatmul.mubr.msk.bf16.gmra.mrb[4].mxu0 %vm264_vm0, %v2864_v5  ;;  %2560 = vmatmul.mubr.msk.bf16.gmra.mrb[4].mxu1 %vm264_vm0, %v2882_v12 }
  0x13   :  { %2515 = vmatprep.mubr.msk.bf16.mxu0 %vm264_vm0, %v2865_v6  ;;  %2563 = vmatprep.mubr.msk.bf16.mxu1 %vm264_vm0, %v2885_v13  ;;  %v770_v13 = vshra.s32 %v3129_v62, 3 }
  0x1a   :  { %2516 = vmatmul.mubr.msk.bf16.gmra.mrb[8].mxu0 %vm264_vm0, %v2866_v9  ;;  %2564 = vmatmul.mubr.msk.bf16.gmra.mrb[8].mxu1 %vm264_vm0, %v2887_v16 }
  0x1b   :  { %2519 = vmatprep.mubr.msk.bf16.mxu0 %vm264_vm0, %v2867_v11  ;;  %2567 = vmatprep.mubr.msk.bf16.mxu1 %vm264_vm0, %v2890_v17  ;;  %v771_v11 = vshra.s32 %v739_v2, 3  ;;  %v753_v17 = vadd.s32 120, %v3129_v62 }
  0x22   :  { %2520 = vmatmul.mubr.msk.bf16.gmra.mrb[12].mxu0 %vm264_vm0, %v2868_v14  ;;  %2568 = vmatmul.mubr.msk.bf16.gmra.mrb[12].mxu1 %vm264_vm0, %v2892_v20  ;;  %v787_v20 = vand.u32 7, %v771_v11 }
  0x23   :  { %2523 = vmatprep.mubr.msk.bf16.mxu0 %vm264_vm0, %v2869_v15  ;;  %v740_v15 = vadd.s32 16, %v3129_v62 }
  0x24   :  { %vm851_vm1 = vcmp.lt.s32.totalorder %v787_v20, 7 }
  0x25   :  { %v756_v10 = vand.u32 7, %v740_v15 }
  0x27   :  { %vm3225_vm8 = vcmp.lt.s32.totalorder %v756_v10, 7 }
  0x2a   :  { %2524 = vmatmul.mubr.msk.bf16.gmra.mrb[16].mxu0 %vm264_vm0, %v2870_v18  ;;  %v3164_v18 = vadd.s32 24, %v3129_v62 }
  0x2b   :  { %2527 = vmatprep.mubr.msk.bf16.mxu0 %vm264_vm0, %v2871_v19 }
  0x2c   :  { %v773_v37 = vshra.s32 %v3164_v18, 3 }
  0x32   :  { %2528 = vmatmul.mubr.msk.bf16.gmra.mrb[20].mxu0 %vm264_vm0, %v2872_v21  ;;  %v789_v21 = vand.u32 7, %v773_v37 }
  0x33   :  { %2531 = vmatprep.mubr.msk.bf16.mxu0 %vm264_vm0, %v2873_v22 }
  0x34   :  { %vm853_vm7 = vcmp.lt.s32.totalorder %v789_v21, 7 }
  0x3a   :  { %2532 = vmatmul.mubr.msk.bf16.gmra.mrb[24].mxu0 %vm264_vm0, %v2874_v23  ;;  %v786_v23 = vand.u32 7, %v770_v13 }
  0x3b   :  { %2535 = vmatprep.mubr.msk.bf16.mxu0 %vm264_vm0, %v2875_v24  ;;  %v755_v24 = vand.u32 7, %v739_v2  ;;  %v742_v2 = vadd.s32 32, %v3129_v62 }
  0x3c   :  { %vm850_vm2 = vcmp.lt.s32.totalorder %v786_v23, 7 }
  0x3d   :  { %vm803_vm3 = vcmp.lt.s32.totalorder %v755_v24, 7  ;;  %v774_v24 = vshra.s32 %v742_v2, 3  ;;  %v758_v21 = vand.u32 7, %v742_v2 }
  0x3f   :  { %vm3270_vm12 = vcmp.lt.s32.totalorder %v758_v21, 7 }
  0x42   :  { %2536 = vmatmul.mubr.msk.bf16.gmra.mrb[28].mxu0 %vm264_vm0, %v2876_v25  ;;  %v3173_v25 = vadd.s32 40, %v3129_v62 }
  0x43   :  { %2539 = vmatprep.mubr.msk.bf16.mxu0 %vm264_vm0, %v2879_v26  ;;  %v4489_v26 = vmov 0.0  }
  0x44   :  { %v775_v11 = vshra.s32 %v3173_v25, 3  ;;  %v3197_v20 = vsel %vm850_vm2, 1.0, %v4489_v26  ;;  %v3200_v23 = vsel %vm803_vm3, 1.0, %v4489_v26  ;;  %v759_v10 = vand.u32 7, %v3173_v25 }
  0x45   :  { %4568 = vst [vmem:[#allocation19_spill] sm:$0xff] %v3197_v20  ;;  %4569 = vst [vmem:[#allocation20_spill] sm:$0xff] %v3200_v23 }
  0x46   :  { %v791_v37 = vand.u32 7, %v775_v11  ;;  %v3230_v11 = vadd.s32 64, %v3129_v62  ;;  %vm3274_vm13 = vcmp.lt.s32.totalorder %v759_v10, 7 }
  0x48   :  { %vm855_vm9 = vcmp.lt.s32.totalorder %v791_v37, 7  ;;  %v778_v2 = vshra.s32 %v3230_v11, 3 }
  0x4a   :  { %2540 = vmatmul.mubr.msk.bf16.gmra.mrb[32].mxu0 %vm264_vm0, %v2880_v27 }
  0x4b   :  { %2543 = vmatprep.mubr.msk.bf16.mxu0 %vm264_vm0, %v2883_v28  ;;  %v754_v28 = vand.u32 7, %v3129_v62 }
  0x4d   :  { %vm802_vm4 = vcmp.lt.s32.totalorder %v754_v28, 7  ;;  %v744_v28 = vadd.s32 48, %v3129_v62 }
  0x52   :  { %2544 = vmatmul.mubr.msk.bf16.gmra.mrb[36].mxu0 %vm264_vm0, %v2884_v29  ;;  %v769_v29 = vand.u32 7, %v753_v17 }
  0x53   :  { %2547 = vmatprep.mubr.msk.bf16.mxu0 %vm264_vm0, %v2886_v30  ;;  %v772_v30 = vshra.s32 %v740_v15, 3 }
  0x54   :  { %vm817_vm5 = vcmp.lt.s32.totalorder %v769_v29, 7 }
  0x55   :  { %v788_v13 = vand.u32 7, %v772_v30  ;;  %v3211_v15 = vsel %vm817_vm5, 1.0, %v4489_v26 }
  0x56   :  { %4572 = vst [vmem:[#allocation23_spill] sm:$0xff] %v3211_v15  ;;  %v790_v15 = vand.u32 7, %v774_v24  ;;  %v3246_v24 = vadd.s32 80, %v3129_v62 }
  0x57   :  { %vm852_vm6 = vcmp.lt.s32.totalorder %v788_v13, 7 }
  0x58   :  { %vm854_vm10 = vcmp.lt.s32.totalorder %v790_v15, 7  ;;  %v762_v15 = vand.u32 7, %v3230_v11 }
  0x5a   :  { %2548 = vmatmul.mubr.msk.bf16.gmra.mrb[40].mxu0 %vm264_vm0, %v2888_v31  ;;  %v3190_v31 = vsel %vm851_vm1, 1.0, %v4489_v26  ;;  %vm810_vm5 = vcmp.lt.s32.totalorder %v762_v15, 7 }
  0x5b   :  { %2551 = vmatprep.mubr.msk.bf16.mxu0 %vm264_vm0, %v2889_v32  ;;  %4565 = vst [vmem:[#allocation16_spill] sm:$0xff] %v3190_v31  ;;  %v3253_v56 = vmul.f32 %v3190_v31, %v3200_v23 }
  0x5d   :  { %4579 = vst [vmem:[#allocation27_spill] sm:$0xff] %v3253_v56 }
  0x62   :  { %2552 = vmatmul.mubr.msk.bf16.gmra.mrb[44].mxu0 %vm264_vm0, %v2891_v33  ;;  %v785_v33 = vshra.s32 %v753_v17, 3 }
  0x64   :  { %v3192_v17 = vand.u32 7, %v785_v33  ;;  %v3208_v33 = vsel %vm802_vm4, 1.0, %v4489_v26 }
  0x65   :  { %4571 = vst [vmem:[#allocation22_spill] sm:$0xff] %v3208_v33  ;;  %v3237_v29 = vmul.f32 %v3197_v20, %v3208_v33 }
  0x66   :  { %4566 = vst [vmem:[#allocation17_spill] sm:$0xff] %v3192_v17  ;;  %v3219_v17 = vadd.s32 72, %v3129_v62 }
  0x67   :  { %4577 = vst [vmem:[#allocation26_spill] sm:$0xff] %v3237_v29 }
  0x68   :  { %v763_v26 = vand.u32 7, %v3219_v17 }
  0xdd   :  { %v3074_v34 = vpop.f32.mrb[0].mxu0  ;;  %v3093_v43 = vpop.f32.mrb[0].mxu1 }
  0xde   :  { %v3076_v35 = vpop.f32.mrb[1].mxu0  ;;  %v3095_v44 = vpop.f32.mrb[1].mxu1 }
  0xdf   :  { %v3078_v36 = vpop.f32.mrb[2].mxu0  ;;  %v3097_v45 = vpop.f32.mrb[2].mxu1 }
  0xe0   :  { %v3083_v38 = vpop.f32.mrb[3].mxu0  ;;  %v3099_v46 = vpop.f32.mrb[3].mxu1 }
  0xe5   :  { %v3085_v39 = vpop.f32.mrb[4].mxu0  ;;  %v3109_v51 = vpop.f32.mrb[4].mxu1 }
  0xe6   :  { %v3087_v40 = vpop.f32.mrb[5].mxu0  ;;  %v3111_v52 = vpop.f32.mrb[5].mxu1 }
  0xe7   :  { %v3089_v41 = vpop.f32.mrb[6].mxu0  ;;  %v3113_v53 = vpop.f32.mrb[6].mxu1 }
  0xe8   :  { %v3091_v42 = vpop.f32.mrb[7].mxu0  ;;  %v3115_v54 = vpop.f32.mrb[7].mxu1 }
  0xed   :  { %v3101_v47 = vpop.f32.mrb[8].mxu0  ;;  %v3125_v60 = vpop.f32.mrb[8].mxu1 }
  0xee   :  { %4551 = vst [vmem:[#allocation2_spill] sm:$0xff] %v3101_v47  ;;  %v3103_v48 = vpop.f32.mrb[9].mxu0  ;;  %v3127_v61 = vpop.f32.mrb[9].mxu1 }
  0xef   :  { %4552 = vst [vmem:[#allocation3_spill] sm:$0xff] %v3103_v48  ;;  %v3105_v49 = vpop.f32.mrb[10].mxu0  ;;  %4558 = vst [vmem:[#allocation9_spill] sm:$0xff] %v3127_v61  ;;  %v3131_v63 = vpop.f32.mrb[10].mxu1  ;;  %v794_v61 = vand.u32 7, %v778_v2  ;;  %v3320_v48 = vadd.s32 88, %v3129_v62 }
  0xf0   :  { %4553 = vst [vmem:[#allocation4_spill] sm:$0xff] %v3105_v49  ;;  %v3107_v50 = vpop.f32.mrb[11].mxu0  ;;  %4559 = vst [vmem:[#allocation10_spill] sm:$0xff] %v3131_v63  ;;  %v3133_v0 = vpop.f32.mrb[11].mxu1  ;;  %v777_v49 = vshra.s32 %v745_v3, 3  ;;  %v760_v63 = vand.u32 7, %v744_v28 }
  0xf1   :  { %4554 = vst [vmem:[#allocation5_spill] sm:$0xff] %v3107_v50  ;;  %4560 = vst [vmem:[#allocation11_spill] sm:$0xff] %v3133_v0  ;;  %v779_v0 = vshra.s32 %v3219_v17, 3  ;;  %v780_v50 = vshra.s32 %v3246_v24, 3  ;;  %vm858_vm4 = vcmp.lt.s32.totalorder %v794_v61, 7 }
  0xf2   :  { %vm808_vm15 = vcmp.lt.s32.totalorder %v760_v63, 7 }
  0xf5   :  { %v3117_v55 = vpop.f32.mrb[12].mxu0  ;;  %v3150_v9 = vpop.f32.mrb[12].mxu1 }
  0xf6   :  { %4555 = vst [vmem:[#allocation6_spill] sm:$0xff] %v3117_v55  ;;  %v3119_v57 = vpop.f32.mrb[13].mxu0  ;;  %4561 = vst [vmem:[#allocation12_spill] sm:$0xff] %v3150_v9  ;;  %v3154_v12 = vpop.f32.mrb[13].mxu1  ;;  %v4578_v9 = vmov 0.0   ;;  %v761_v55 = vand.u32 7, %v745_v3 }
  0xf7   :  { %v3121_v58 = vpop.f32.mrb[14].mxu0  ;;  %4562 = vst [vmem:[#allocation13_spill] sm:$0xff] %v3154_v12  ;;  %v3157_v14 = vpop.f32.mrb[14].mxu1  ;;  %v776_v12 = vshra.s32 %v744_v28, 3  ;;  %v3258_v25 = vsel %vm3225_vm8, 1.0, %v4578_v9  ;;  %v3264_v37 = vsel %vm855_vm9, 1.0, %v4578_v9 }
  0xf8   :  { %4556 = vst [vmem:[#allocation7_spill] sm:$0xff] %v3121_v58  ;;  %v3123_v59 = vpop.f32.mrb[15].mxu0  ;;  %4563 = vst [vmem:[#allocation14_spill] sm:$0xff] %v3157_v14  ;;  %v3160_v16 = vpop.f32.mrb[15].mxu1  ;;  %v757_v14 = vand.u32 7, %v3164_v18  ;;  %v3249_v18 = vsel %vm853_vm7, 1.0, %v4578_v9 }
  0xf9   :  { %4557 = vst [vmem:[#allocation8_spill] sm:$0xff] %v3123_v59  ;;  %4564 = vst [vmem:[#allocation15_spill] sm:$0xff] %v3160_v16  ;;  %v3308_v3 = vsel %vm3274_vm13, 1.0, %v4578_v9  ;;  %vm3315_vm3 = vcmp.lt.s32.totalorder %v761_v55, 7  ;;  %v3327_v21 = vsel %vm808_vm15, 1.0, %v4578_v9  ;;  %vm811_vm8 = vcmp.lt.s32.totalorder %v763_v26, 7 }
  0xfa   :  { %4580 = vst [vmem:[#allocation28_spill] sm:$0xff] %v3258_v25  ;;  %vm805_vm11 = vcmp.lt.s32.totalorder %v757_v14, 7  ;;  %v795_v14 = vand.u32 7, %v779_v0  ;;  %v3303_v0 = vsel %vm3270_vm12, 1.0, %v4578_v9  ;;  %4591 = vst [vmem:[#allocation35_spill] sm:$0xff] %v3308_v3  ;;  %v3335_v55 = vmul.f32 %v3264_v37, %v3308_v3 }
  0xfb   :  { %v3288_v10 = vsel %vm805_vm11, 1.0, %v4578_v9  ;;  %4590 = vst [vmem:[#allocation34_spill] sm:$0xff] %v3303_v0  ;;  %4595 = vst [vmem:[#allocation37_spill] sm:$0xff] %v3327_v21  ;;  %v3347_v59 = vld [vmem:[%s4485_s2] ss:$0 sm:$0xff]  ;;  %v3370_v61 = vsel %vm810_vm5, 1.0, %v4578_v9 }
  0xfc   :  { %4588 = vst [vmem:[#allocation32_spill] sm:$0xff] %v3288_v10  ;;  %v3313_v2 = vmul.f32 %v3249_v18, %v3288_v10  ;;  %vm859_vm2 = vcmp.lt.s32.totalorder %v795_v14, 7  ;;  %4597 = vst [vmem:[#allocation39_spill] sm:$0xff] %v3335_v55  ;;  %v3381_v26 = vadd.s32 104, %v3129_v62  ;;  %vm1204_vm5 = vcmask 130048  }
  0xfd   :  { %v3135_v1 = vpop.f32.mrb[16].mxu0  ;;  %4602 = vst [vmem:[#allocation42_spill] sm:$0xff] %v3370_v61 }
  0xfe   :  { %v3140_v4 = vpop.f32.mrb[17].mxu0  ;;  %4592 = vst [vmem:[#allocation36_spill] sm:$0xff] %v3313_v2  ;;  %v4600_v15 = vmax.f32 %v3074_v34, %v3135_v1 }
  0xff   :  { %v3144_v6 = vpop.f32.mrb[18].mxu0  ;;  %v4601_v28 = vmax.f32 %v3076_v35, %v3140_v4 }
 0x100   :  { %v3148_v8 = vpop.f32.mrb[19].mxu0 }
 0x105   :  { %v3166_v19 = vpop.f32.mrb[20].mxu0 }
 0x106   :  { %v3170_v22 = vpop.f32.mrb[21].mxu0 }
 0x107   :  { %v3177_v27 = vpop.f32.mrb[22].mxu0 }
 0x108   :  { %v3182_v32 = vpop.f32.mrb[23].mxu0 }
 0x10d   :  { %v3194_v7 = vpop.f32.mrb[24].mxu0 }
 0x10e   :  { %4567 = vst [vmem:[#allocation18_spill] sm:$0xff] %v3194_v7  ;;  %v3205_v30 = vpop.f32.mrb[25].mxu0  ;;  %v3294_v7 = vsel %vm854_vm10, 1.0, %v4578_v9 }
 0x10f   :  { %4570 = vst [vmem:[#allocation21_spill] sm:$0xff] %v3205_v30  ;;  %v3215_v5 = vpop.f32.mrb[26].mxu0 }
 0x110   :  { %4573 = vst [vmem:[#allocation24_spill] sm:$0xff] %v3215_v5  ;;  %v3223_v16 = vpop.f32.mrb[27].mxu0  ;;  %v3242_v5 = vsel %vm852_vm6, 1.0, %v4578_v9  ;;  %vm930_vm6 = vcmp.lt.s32.totalorder %v3129_v62, 7 }
 0x111   :  { %4574 = vst [vmem:[#allocation25_spill] sm:$0xff] %v3223_v16  ;;  %v792_v16 = vand.u32 7, %v776_v12  ;;  %v793_v12 = vand.u32 7, %v777_v49  ;;  %v3298_v49 = vmul.f32 %v3242_v5, %v3258_v25 }
 0x113   :  { %4589 = vst [vmem:[#allocation33_spill] sm:$0xff] %v3298_v49  ;;  %vm856_vm14 = vcmp.lt.s32.totalorder %v792_v16, 7  ;;  %vm857_vm1 = vcmp.lt.s32.totalorder %v793_v12, 7  ;;  %v796_v16 = vand.u32 7, %v780_v50  ;;  %v3331_v50 = vmul.f32 %v3294_v7, %v3303_v0 }
 0x114   :  { %v3324_v11 = vsel %vm856_vm14, 1.0, %v4578_v9  ;;  %v3339_v17 = vsel %vm857_vm1, 1.0, %v4578_v9 }
 0x115   :  { %v3261_v13 = vpop.f32.mrb[28].mxu0  ;;  %4596 = vst [vmem:[#allocation38_spill] sm:$0xff] %v3331_v50  ;;  %vm860_vm7 = vcmp.lt.s32.totalorder %v796_v16, 7  ;;  %v764_v16 = vand.u32 7, %v3246_v24  ;;  %v3389_v24 = vmul.f32 %v3324_v11, %v3327_v21 }
 0x116   :  { %4581 = vst [vmem:[#allocation29_spill] sm:$0xff] %v3261_v13  ;;  %v3268_v30 = vpop.f32.mrb[29].mxu0 }
 0x117   :  { %v3280_v47 = vpop.f32.mrb[30].mxu0  ;;  %4605 = vst [vmem:[#allocation43_spill] sm:$0xff] %v3389_v24  ;;  %vm3408_vm9 = vcmp.lt.s32.totalorder %v764_v16, 7 }
 0x118   :  { %4586 = vst [vmem:[#allocation30_spill] sm:$0xff] %v3280_v47  ;;  %v3285_v13 = vpop.f32.mrb[31].mxu0 }
 0x119   :  { %4587 = vst [vmem:[#allocation31_spill] sm:$0xff] %v3285_v13  ;;  %v3342_v13 = vsel %vm859_vm2, 1.0, %v4578_v9 }
 0x11a   :  { %4598 = vst [vmem:[#allocation40_spill] sm:$0xff] %v3342_v13 }
 0x11d   :  { %v2541_v63 = vpop.f32.mrb[32].mxu0 }
 0x11e   :  { %v668_v12 = vmax.f32 %v2541_v63, %v3093_v43  ;;  %v523_v14 = vpop.f32.mrb[33].mxu0  ;;  %v3354_v43 = vsel %vm3315_vm3, 1.0, %v4578_v9  ;;  %v3358_v63 = vsel %vm858_vm4, 1.0, %v4578_v9  ;;  %vm1187_vm4 = vcmask 64512  }
 0x11f   :  { %v666_v50 = vmax.f32 %v523_v14, %v3095_v44  ;;  %v2542_v0 = vpop.f32.mrb[34].mxu0  ;;  %4599 = vst [vmem:[#allocation41_spill] sm:$0xff] %v3354_v43  ;;  %v781_v14 = vshra.s32 %v3320_v48, 3 }
 0x120   :  { %v684_v55 = vmax.f32 %v4600_v15, %v668_v12  ;;  %v669_v3 = vmax.f32 %v2542_v0, %v3097_v45  ;;  %v526_v44 = vpop.f32.mrb[35].mxu0  ;;  %v4603_v45 = vmax.f32 %v3078_v36, %v3144_v6  ;;  %v3378_v0 = vsel %vm860_vm7, 1.0, %v4578_v9 }
 0x121   :  { %v682_v47 = vmax.f32 %v4601_v28, %v666_v50  ;;  %v667_v58 = vmax.f32 %v526_v44, %v3099_v46  ;;  %v4604_v46 = vmax.f32 %v3083_v38, %v3148_v8  ;;  %v3392_v50 = vsel %vm811_vm8, 1.0, %v4578_v9 }
 0x122   :  { %v707_v34 = vadd.f32 %v3347_v59, %v684_v55  ;;  %v685_v1 = vmax.f32 %v4603_v45, %v669_v3  ;;  %4606 = vst [vmem:[#allocation44_spill] sm:$0xff] %v3392_v50  ;;  %v3399_v3 = vmul.f32 %v3339_v17, %v3354_v43  ;;  %v3406_v8 = vand.u32 7, %v781_v14 }
 0x123   :  { %v705_v35 = vadd.f32 %v3347_v59, %v682_v47  ;;  %v683_v4 = vmax.f32 %v4604_v46, %v667_v58  ;;  %v3403_v47 = vmul.f32 %v3358_v63, %v3370_v61  ;;  %v3413_v12 = vadd.s32 112, %v3129_v62 }
 0x124   :  { %v3394_v36 = vmax.f32 %v707_v34, 0.0  ;;  %v708_v6 = vadd.f32 %v3347_v59, %v685_v1  ;;  %4607 = vst [vmem:[#allocation45_spill] sm:$0xff] %v3399_v3  ;;  %v3422_v45 = vmul.f32 %v3342_v13, %v3392_v50  ;;  %vm861_vm10 = vcmp.lt.s32.totalorder %v3406_v8, 7 }
 0x125   :  { %4608 = vst [vmem:[#allocation46_spill] sm:$0xff] %v3403_v47  ;;  %v706_v38 = vadd.f32 %v3347_v59, %v683_v4  ;;  %v2545_v58 = vpop.f32.mrb[36].mxu0  ;;  %v3415_v15 = vmax.f32 %v705_v35, 0.0  ;;  %v3430_v35 = vadd.s32 96, %v3129_v62  ;;  %v4613_v4 = vmax.f32 %v3085_v39, %v3166_v19 }
 0x126   :  { %v3417_v44 = vmax.f32 %v708_v6, 0.0  ;;  %v672_v28 = vmax.f32 %v2545_v58, %v3109_v51  ;;  %v539_v34 = vpop.f32.mrb[37].mxu0  ;;  %4612 = vst [vmem:[#allocation48_spill] sm:$0xff] %v3422_v45  ;;  %v964_v46 = vmul.f32 %v3190_v31, %v3394_v36  ;;  %v916_v45 = vrot.slane %v3394_v36, 1 }
 0x127   :  { %4611 = vst [vmem:[#allocation47_spill] sm:$0xff] %v3415_v15  ;;  %v3424_v14 = vmax.f32 %v706_v38, 0.0  ;;  %v670_v16 = vmax.f32 %v539_v34, %v3111_v52  ;;  %v2546_v1 = vpop.f32.mrb[38].mxu0  ;;  %v4614_v52 = vmax.f32 %v3087_v40, %v3170_v22  ;;  %vm1221_vm7 = vcmask 195584  }
 0x128   :  { %v688_v51 = vmax.f32 %v4613_v4, %v672_v28  ;;  %v673_v6 = vmax.f32 %v2546_v1, %v3113_v53  ;;  %v542_v58 = vpop.f32.mrb[39].mxu0  ;;  %v917_v38 = vrot.slane %v3417_v44, 1  ;;  %v4615_v53 = vmax.f32 %v3089_v41, %v3177_v27 }
 0x129   :  { %v686_v34 = vmax.f32 %v4614_v52, %v670_v16  ;;  %v671_v31 = vmax.f32 %v542_v58, %v3115_v54  ;;  %v963_v47 = vmul.f32 %v3197_v20, %v3424_v14  ;;  %v915_v50 = vrot.slane %v3424_v14, 1  ;;  %v4624_v20 = vld [vmem:[#allocation21_spill] sm:$0xff] }
 0x12a   :  { %v711_v39 = vadd.f32 %v3347_v59, %v688_v51  ;;  %v689_v19 = vmax.f32 %v4615_v53, %v673_v6  ;;  %v4517_v28 = vrot.slane %v3415_v15, 1  ;;  %v3452_v1 = vsel %vm930_vm6, %v916_v45, %v917_v38  ;;  %v4618_v53 = vld [vmem:[#allocation9_spill] sm:$0xff] }
 0x12b   :  { %v709_v40 = vadd.f32 %v3347_v59, %v686_v34  ;;  %v4616_v54 = vmax.f32 %v3091_v42, %v3182_v32  ;;  %v2619_v16 = vpack.i.bf16 %v964_v46, %v963_v47  ;;  %v944_v4 = vsel %vm930_vm6, %v915_v50, %v916_v45 }
 0x12c   :  { %v3464_v41 = vsel %vm930_vm6, %v4517_v28, %v915_v50  ;;  %v948_v27 = vmul.f32 %v3200_v23, %v944_v4  ;;  %v965_v51 = vmul.f32 %v3242_v5, %v3417_v44  ;;  %v3472_v42 = vsel %vm3408_vm9, 1.0, %v4578_v9  ;;  %v4620_v28 = vld [vmem:[#allocation18_spill] sm:$0xff]  ;;  %v4623_v23 = vld [vmem:[#allocation3_spill] sm:$0xff] }
 0x12d   :  { %v687_v22 = vmax.f32 %v4616_v54, %v671_v31  ;;  %4617 = vst [vmem:[#allocation49_spill] sm:$0xff] %v3472_v42  ;;  %v2894_v31 = vld [vmem:[%s4484_s3 + $0x8] sm:$0xff]   ;;  %v3477_v32 = vmax.f32 %v711_v39, 0.0  ;;  %v3479_v47 = vmax.f32 %v709_v40, 0.0  ;;  %2620 = vrot.lane.b32.xlu1 %v2619_v16, %s2902_s18  ;;  %v2549_v45 = vpop.f32.mrb[40].mxu0  ;;  %v947_v46 = vmul.f32 %v3208_v33, %v3464_v41  ;;  %v4622_v33 = vld [vmem:[#allocation10_spill] sm:$0xff] }
 0x12e   :  { %v712_v55 = vadd.f32 %v3347_v59, %v689_v19  ;;  %v676_v6 = vmax.f32 %v2549_v45, %v3125_v60  ;;  %v555_v58 = vpop.f32.mrb[41].mxu0  ;;  %v979_v52 = vmul.f32 %v944_v4, %v3237_v29  ;;  %v980_v34 = vmul.f32 %v3452_v1, %v3253_v56  ;;  %2573 = vmatprep.subr.bf16.mxu1 %v2894_v31  ;;  %v4619_v19 = vld [vmem:[#allocation2_spill] sm:$0xff] }
 0x12f   :  { %v710_v50 = vadd.f32 %v3347_v59, %v687_v22  ;;  %v674_v40 = vmax.f32 %v555_v58, %v4618_v53  ;;  %v2550_v54 = vpop.f32.mrb[42].mxu0  ;;  %v2624_v22 = vpack.i.bf16 %v948_v27, %v947_v46  ;;  %v966_v16 = vmul.f32 %v3249_v18, %v3479_v47  ;;  %2574 = vmatpush3.bf16.msra.mxu1 %v2894_v31  ;;  %v4626_v27 = vld [vmem:[#allocation11_spill] sm:$0xff] }
 0x130   :  { %v4621_v60 = vmax.f32 %v4619_v19, %v4620_v28  ;;  %v677_v4 = vmax.f32 %v2550_v54, %v4622_v33  ;;  %v558_v29 = vpop.f32.mrb[43].mxu0  ;;  %v4625_v58 = vmax.f32 %v4623_v23, %v4624_v20  ;;  %v4628_v33 = vld [vmem:[#allocation24_spill] sm:$0xff]  ;;  %v3515_v23 = vmax.f32 %v712_v55, 0.0 }
 0x131   :  { %v3490_v39 = vmax.f32 %v710_v50, 0.0  ;;  %2625 = vrot.lane.b32.xlu0 %v2624_v22, %s2903_s19  ;;  %v675_v31 = vmax.f32 %v558_v29, %v4626_v27  ;;  %v2634_v46 = vpack.i.bf16 %v966_v16, %v965_v51  ;;  %v918_v50 = vrot.slane %v3479_v47, 1  ;;  %v4630_v29 = vld [vmem:[#allocation5_spill] sm:$0xff] }
 0x132   :  { %v692_v45 = vmax.f32 %v4621_v60, %v676_v6  ;;  %v690_v53 = vmax.f32 %v4625_v58, %v674_v40  ;;  %v4627_v6 = vld [vmem:[#allocation4_spill] sm:$0xff]  ;;  %v968_v60 = vmul.f32 %v3264_v37, %v3477_v32  ;;  %v4631_v51 = vld [vmem:[#allocation25_spill] sm:$0xff]  ;;  %v2629_v58 = vpack.i.bf16 %v980_v34, %v979_v52 }
 0x133   :  { %v967_v28 = vmul.f32 %v3294_v7, %v3490_v39  ;;  %v4629_v54 = vmax.f32 %v4627_v6, %v4628_v33  ;;  %v919_v20 = vrot.slane %v3490_v39, 1  ;;  %v4632_v22 = vmax.f32 %v4630_v29, %v4631_v51  ;;  %2635 = vrot.lane.b32.xlu1 %v2634_v46, %s2902_s18 }
 0x134   :  { %v713_v40 = vadd.f32 %v3347_v59, %v690_v53  ;;  %v942_v33 = vsel %vm930_vm6, %v917_v38, %v918_v50  ;;  %v949_v38 = vmul.f32 %v3258_v25, %v3452_v1  ;;  %v4644_v25 = vld [vmem:[#allocation34_spill] sm:$0xff] }
 0x135   :  { %v693_v19 = vmax.f32 %v4629_v54, %v677_v4  ;;  %v691_v16 = vmax.f32 %v4632_v22, %v675_v31  ;;  %v715_v4 = vadd.f32 %v3347_v59, %v692_v45  ;;  %v2639_v27 = vpack.i.bf16 %v968_v60, %v967_v28  ;;  %2630 = vrot.lane.b32.xlu0 %v2629_v58, %s2904_s20  ;;  %v2553_v31 = vpop.f32.mrb[44].mxu0  ;;  %v4633_v45 = vld [vmem:[#allocation12_spill] sm:$0xff]  ;;  %v4634_v60 = vld [vmem:[#allocation13_spill] sm:$0xff] }
 0x136   :  { %v941_v6 = vsel %vm930_vm6, %v918_v50, %v919_v20  ;;  %v3527_v55 = vmax.f32 %v713_v40, 0.0  ;;  %v981_v46 = vmul.f32 %v942_v33, %v3298_v49  ;;  %v680_v28 = vmax.f32 %v2553_v31, %v4633_v45  ;;  %v571_v54 = vpop.f32.mrb[45].mxu0  ;;  %v4636_v31 = vld [vmem:[#allocation29_spill] sm:$0xff] }
 0x137   :  { %v714_v53 = vadd.f32 %v3347_v59, %v691_v16  ;;  %v982_v52 = vmul.f32 %v941_v6, %v3313_v2  ;;  %v716_v34 = vadd.f32 %v3347_v59, %v693_v19  ;;  %v950_v50 = vmul.f32 %v3288_v10, %v942_v33  ;;  %v2554_v29 = vpop.f32.mrb[46].mxu0  ;;  %v4635_v19 = vld [vmem:[#allocation6_spill] sm:$0xff] }
 0x138   :  { %v678_v40 = vmax.f32 %v571_v54, %v4634_v60  ;;  %v969_v22 = vmul.f32 %v3324_v11, %v3515_v23  ;;  %v970_v16 = vmul.f32 %v3339_v17, %v3527_v55  ;;  %v4637_v45 = vmax.f32 %v4635_v19, %v4636_v31  ;;  %v4638_v2 = vld [vmem:[#allocation14_spill] sm:$0xff]  ;;  %v574_v49 = vpop.f32.mrb[47].mxu0  ;;  %v4640_v54 = vld [vmem:[#allocation15_spill] sm:$0xff] }
 0x139   :  { %v2649_v51 = vpack.i.bf16 %v982_v52, %v981_v46  ;;  %v3544_v58 = vmax.f32 %v714_v53, 0.0  ;;  %v681_v1 = vmax.f32 %v2554_v29, %v4638_v2  ;;  %v920_v33 = vrot.slane %v3477_v32, 1  ;;  %2640 = vrot.lane.b32.xlu0 %v2639_v27, %s2902_s18  ;;  %v4641_v19 = vld [vmem:[#allocation7_spill] sm:$0xff]  ;;  %v4645_v27 = vld [vmem:[#allocation8_spill] sm:$0xff] }
 0x13a   :  { %v696_v56 = vmax.f32 %v4637_v45, %v680_v28  ;;  %v4639_v46 = vmax.f32 %v3119_v57, %v3268_v30  ;;  %v679_v53 = vmax.f32 %v574_v49, %v4640_v54  ;;  %v2664_v60 = vpack.i.bf16 %v970_v16, %v969_v22  ;;  %v4642_v28 = vld [vmem:[#allocation30_spill] sm:$0xff]  ;;  %v4648_v49 = vld [vmem:[#allocation35_spill] sm:$0xff] }
 0x13b   :  { %2650 = vrot.lane.b32.xlu1 %v2649_v51, %s2904_s20  ;;  %v921_v10 = vrot.slane %v3515_v23, 1  ;;  %v4643_v31 = vmax.f32 %v4641_v19, %v4642_v28  ;;  %v2644_v29 = vpack.i.bf16 %v950_v50, %v949_v38  ;;  %v940_v45 = vsel %vm930_vm6, %v919_v20, %v920_v33 }
 0x13c   :  { %v694_v52 = vmax.f32 %v4639_v46, %v678_v40  ;;  %v951_v57 = vmul.f32 %v4644_v25, %v941_v6  ;;  %v4646_v40 = vld [vmem:[#allocation31_spill] sm:$0xff]  ;;  %v952_v22 = vmul.f32 %v4648_v49, %v940_v45  ;;  %v922_v16 = vrot.slane %v3527_v55, 1 }
 0x13d   :  { %v697_v2 = vmax.f32 %v4643_v31, %v681_v1  ;;  %v4647_v51 = vmax.f32 %v4645_v27, %v4646_v40  ;;  %v939_v54 = vsel %vm930_vm6, %v920_v33, %v921_v10  ;;  %v765_v38 = vand.u32 7, %v3320_v48  ;;  %2645 = vrot.lane.b32.xlu0 %v2644_v29, %s2903_s19  ;;  %v4650_v27 = vld [vmem:[#allocation39_spill] sm:$0xff] }
 0x13e   :  { %v717_v30 = vadd.f32 %v3347_v59, %v694_v52  ;;  %v768_v50 = vand.u32 7, %v3413_v12  ;;  %v782_v20 = vshra.s32 %v3430_v35, 3  ;;  %v3575_v6 = vmax.f32 %v715_v4, 0.0 }
 0x13f   :  { %v695_v46 = vmax.f32 %v4647_v51, %v679_v53  ;;  %v3577_v1 = vmax.f32 %v716_v34, 0.0  ;;  %v720_v52 = vadd.f32 %v3347_v59, %v697_v2  ;;  %2665 = vrot.lane.b32.xlu1 %v2664_v60, %s2902_s18  ;;  %v938_v53 = vsel %vm930_vm6, %v921_v10, %v922_v16  ;;  %v4649_v34 = vld [vmem:[#allocation38_spill] sm:$0xff] }
 0x140   :  { %v719_v33 = vadd.f32 %v3347_v59, %v696_v56  ;;  %v3585_v48 = vmax.f32 %v717_v30, 0.0  ;;  %v953_v19 = vmul.f32 %v3327_v21, %v939_v54  ;;  %v954_v4 = vmul.f32 %v3354_v43, %v938_v53 }
 0x141   :  { %v2654_v28 = vpack.i.bf16 %v952_v22, %v951_v57  ;;  %v983_v31 = vmul.f32 %v940_v45, %v4649_v34  ;;  %v984_v2 = vmul.f32 %v939_v54, %v4650_v27  ;;  %v923_v29 = vrot.slane %v3544_v58, 1 }
 0x142   :  { %v2674_v40 = vpack.i.bf16 %v954_v4, %v953_v19  ;;  %v3595_v10 = vsel %vm861_vm10, 1.0, %v4578_v9  ;;  %vm3597_vm11 = vcmp.lt.s32.totalorder %v765_v38, 7  ;;  %v798_v60 = vand.u32 7, %v782_v20 }
 0x143   :  { %v3601_v30 = vmax.f32 %v720_v52, 0.0  ;;  %v718_v57 = vadd.f32 %v3347_v59, %v695_v46  ;;  %2655 = vrot.lane.b32.xlu0 %v2654_v28, %s2903_s19  ;;  %v937_v45 = vsel %vm930_vm6, %v922_v16, %v923_v29  ;;  %v985_v51 = vmul.f32 %v938_v53, %v3389_v24 }
 0x144   :  { %2675 = vrot.lane.b32.xlu1 %v2674_v40, %s2903_s19  ;;  %v986_v8 = vmul.f32 %v937_v45, %v3399_v3  ;;  %v971_v22 = vmul.f32 %v3358_v63, %v3544_v58  ;;  %v924_v54 = vrot.slane %v3575_v6, 1  ;;  %v926_v38 = vrot.slane %v3585_v48, 1 }
 0x145   :  { %4653 = vst [vmem:[#allocation9_spill] sm:$0xff] %v3601_v30  ;;  %v3614_v20 = vmax.f32 %v719_v33, 0.0  ;;  %v2659_v59 = vpack.i.bf16 %v984_v2, %v983_v31  ;;  %v925_v46 = vrot.slane %v3577_v1, 1  ;;  %v4654_v16 = vshra.s32 %v3381_v26, 3 }
 0x146   :  { %v2679_v53 = vpack.i.bf16 %v986_v8, %v985_v51  ;;  %v972_v19 = vmul.f32 %v3342_v13, %v3575_v6  ;;  %v974_v4 = vmul.f32 %v3595_v10, %v3585_v48  ;;  %v936_v28 = vsel %vm930_vm6, %v923_v29, %v924_v54  ;;  %v4658_v8 = vld [vmem:[#allocation44_spill] sm:$0xff] }
 0x147   :  { %v799_v52 = vand.u32 7, %v4654_v16  ;;  %v3625_v40 = vmax.f32 %v718_v57, 0.0  ;;  %2660 = vrot.lane.b32.xlu0 %v2659_v59, %s2904_s20  ;;  %v3631_v33 = vsel %vm3597_vm11, 1.0, %v4578_v9  ;;  %v934_v31 = vsel %vm930_vm6, %v925_v46, %v926_v38  ;;  %v4666_v57 = vld [vmem:[#allocation23_spill] sm:$0xff] }
 0x148   :  { %4655 = vst [vmem:[#allocation2_spill] sm:$0xff] %v3631_v33  ;;  %v929_v2 = vrot.slane %v3601_v30, 1  ;;  %2680 = vrot.lane.b32.xlu1 %v2679_v53, %s2904_s20  ;;  %v2669_v51 = vpack.i.bf16 %v972_v19, %v971_v22  ;;  %v973_v29 = vmul.f32 %v3378_v0, %v3577_v1  ;;  %vm3639_vm12 = vcmp.lt.s32.totalorder %v768_v50, 7 }
 0x149   :  { %vm862_vm13 = vcmp.lt.s32.totalorder %v798_v60, 7  ;;  %v955_v56 = vmul.f32 %v3370_v61, %v937_v45  ;;  %v956_v59 = vmul.f32 %v4658_v8, %v936_v28  ;;  %v935_v16 = vsel %vm930_vm6, %v924_v54, %v925_v46  ;;  %v4664_v61 = vld [vmem:[#allocation48_spill] sm:$0xff] }
 0x14a   :  { %v928_v3 = vrot.slane %v3614_v20, 1  ;;  %v2694_v24 = vpack.i.bf16 %v974_v4, %v973_v29  ;;  %v958_v22 = vmul.f32 %v3631_v33, %v934_v31  ;;  %v766_v53 = vand.u32 7, %v3430_v35  ;;  %v4663_v29 = vld [vmem:[#allocation46_spill] sm:$0xff] }
 0x14b   :  { %v767_v50 = vand.u32 7, %v3381_v26  ;;  %2670 = vrot.lane.b32.xlu0 %v2669_v51, %s2902_s18  ;;  %v4659_v45 = vrot.slane %v3415_v15, 1  ;;  %v927_v54 = vrot.slane %v3625_v40, 1  ;;  %v4660_v46 = vshra.s32 %v3413_v12, 3 }
 0x14c   :  { %v931_v19 = vsel %vm930_vm6, %v928_v3, %v929_v2  ;;  %2695 = vrot.lane.b32.xlu1 %v2694_v24, %s2902_s18  ;;  %v957_v35 = vmul.f32 %v3472_v42, %v935_v16  ;;  %v3666_v26 = vsel %vm3639_vm12, 1.0, %v4578_v9  ;;  %vm863_vm14 = vcmp.lt.s32.totalorder %v799_v52, 7 }
 0x14d   :  { %v946_v8 = vsel %vm930_vm6, %v929_v2, %v4659_v45  ;;  %v800_v4 = vand.u32 7, %v4660_v46  ;;  %4661 = vst [vmem:[#allocation18_spill] sm:$0xff] %v3666_v26  ;;  %v3670_v51 = vsel %vm862_vm13, 1.0, %v4578_v9  ;;  %v2684_v2 = vpack.i.bf16 %v956_v59, %v955_v56  ;;  %v4669_v56 = vld [vmem:[#allocation17_spill] sm:$0xff] }
 0x14e   :  { %4662 = vst [vmem:[#allocation10_spill] sm:$0xff] %v3670_v51  ;;  %v987_v45 = vmul.f32 %v936_v28, %v4663_v29  ;;  %v988_v12 = vmul.f32 %v935_v16, %v4664_v61  ;;  %v3676_v24 = vmul.f32 %v3595_v10, %v3631_v33  ;;  %v2704_v46 = vpack.i.bf16 %v958_v22, %v957_v35 }
 0x14f   :  { %v961_v27 = vmul.f32 %v3666_v26, %v931_v19  ;;  %v962_v34 = vmul.f32 %v4666_v57, %v946_v8  ;;  %vm814_vm15 = vcmp.lt.s32.totalorder %v766_v53, 7  ;;  %2685 = vrot.lane.b32.xlu0 %v2684_v2, %s2903_s19  ;;  %v933_v60 = vsel %vm930_vm6, %v926_v38, %v927_v54 }
 0x150   :  { %4665 = vst [vmem:[#allocation3_spill] sm:$0xff] %v3676_v24  ;;  %vm815_vm1 = vcmp.lt.s32.totalorder %v767_v50, 7  ;;  %2705 = vrot.lane.b32.xlu1 %v2704_v46, %s2903_s19  ;;  %v3685_v52 = vsel %vm863_vm14, 1.0, %v4578_v9  ;;  %v3689_v28 = vmul.f32 %v3378_v0, %v3472_v42  ;;  %vm864_vm2 = vcmp.lt.s32.totalorder %v800_v4, 7 }
 0x151   :  { %4667 = vst [vmem:[#allocation21_spill] sm:$0xff] %v3685_v52  ;;  %vm865_vm3 = vcmp.lt.s32.totalorder %v4669_v56, 7  ;;  %v2689_v59 = vpack.i.bf16 %v988_v12, %v987_v45  ;;  %v975_v16 = vmul.f32 %v3670_v51, %v3625_v40  ;;  %v3695_v22 = vsel %vm814_vm15, 1.0, %v4578_v9 }
 0x152   :  { %4668 = vst [vmem:[#allocation11_spill] sm:$0xff] %v3689_v28  ;;  %4670 = vst [vmem:[#allocation4_spill] sm:$0xff] %v3695_v22  ;;  %v2709_v38 = vpack.i.bf16 %v962_v34, %v961_v27  ;;  %v990_v53 = vmul.f32 %v933_v60, %v3676_v24  ;;  %v3699_v50 = vsel %vm815_vm1, 1.0, %v4578_v9  ;;  %v932_v35 = vsel %vm930_vm6, %v927_v54, %v928_v3 }
 0x153   :  { %4671 = vst [vmem:[#allocation24_spill] sm:$0xff] %v3699_v50  ;;  %2690 = vrot.lane.b32.xlu0 %v2689_v59, %s2904_s20  ;;  %v976_v4 = vmul.f32 %v3685_v52, %v3614_v20  ;;  %v3707_v2 = vsel %vm864_vm2, 1.0, %v4578_v9  ;;  %v3710_v45 = vsel %vm865_vm3, 1.0, %v4578_v9  ;;  %v989_v34 = vmul.f32 %v934_v31, %v3689_v28 }
 0x154   :  { %4672 = vst [vmem:[#allocation5_spill] sm:$0xff] %v3707_v2  ;;  %4673 = vst [vmem:[#allocation25_spill] sm:$0xff] %v3710_v45  ;;  %2710 = vrot.lane.b32.xlu1 %v2709_v38, %s2903_s19  ;;  %v3716_v27 = vmul.f32 %v3670_v51, %v3695_v22  ;;  %v959_v54 = vmul.f32 %v3695_v22, %v933_v60  ;;  %v960_v12 = vmul.f32 %v3699_v50, %v932_v35 }
 0x155   :  { %v2699_v3 = vpack.i.bf16 %v976_v4, %v975_v16  ;;  %v3722_v46 = vmul.f32 %v3685_v52, %v3699_v50  ;;  %v2714_v56 = vpack.i.bf16 %v990_v53, %v989_v34  ;;  %v977_v9 = vmul.f32 %v3707_v2, %v3601_v30 }
 0x156   :  { %4674 = vst [vmem:[#allocation12_spill] sm:$0xff] %v3716_v27  ;;  %v3728_v31 = vmul.f32 %v3707_v2, %v3666_v26  ;;  %v3733_v59 = vmul.f32 %v3710_v45, %v4666_v57  ;;  %v978_v60 = vmul.f32 %v3710_v45, %v3415_v15  ;;  %v2724_v16 = vpack.i.bf16 %v960_v12, %v959_v54 }
 0x157   :  { %4675 = vst [vmem:[#allocation13_spill] sm:$0xff] %v3722_v46  ;;  %2700 = vrot.lane.b32.xlu0 %v2699_v3, %s2902_s18  ;;  %v991_v38 = vmul.f32 %v932_v35, %v3716_v27  ;;  %v992_v53 = vmul.f32 %v931_v19, %v3722_v46 }
 0x158   :  { %4676 = vst [vmem:[#allocation6_spill] sm:$0xff] %v3728_v31  ;;  %4677 = vst [vmem:[#allocation29_spill] sm:$0xff] %v3733_v59  ;;  %2715 = vrot.lane.b32.xlu1 %v2714_v56, %s2904_s20  ;;  %v2719_v4 = vpack.i.bf16 %v978_v60, %v977_v9  ;;  %v993_v34 = vmul.f32 %v946_v8, %v3728_v31  ;;  %v994_v3 = vmul.f32 %v3464_v41, %v3733_v59 }
 0x159   :  { %v2729_v57 = vpack.i.bf16 %v992_v53, %v991_v38 }
 0x15a   :  { %v2734_v56 = vpack.i.bf16 %v994_v3, %v993_v34 }
 0x15b   :  { %2725 = vrot.lane.b32.xlu0 %v2724_v16, %s2903_s19 }
 0x15c   :  { %2720 = vrot.lane.b32.xlu1 %v2719_v4, %s2902_s18 }
 0x15f   :  { %2730 = vrot.lane.b32.xlu0 %v2729_v57, %s2904_s20 }
 0x160   :  { %2735 = vrot.lane.b32.xlu1 %v2734_v56, %s2904_s20 }
 0x19f   :  { %v2621_v54 = vpop.permute.xlu1 %2620 }
 0x1a0   :  { %v2623_v60 = vunpack.i.h.bf16 %v2621_v54  ;;  %v2622_v16 = vunpack.i.l.bf16 %v2621_v54 }
 0x1a3   :  { %v2626_v35 = vpop.permute.xlu0 %2625 }
 0x1a4   :  { %v2628_v19 = vunpack.i.h.bf16 %v2626_v35  ;;  %v2627_v12 = vunpack.i.l.bf16 %v2626_v35 }
 0x1a5   :  { %v2636_v9 = vpop.permute.xlu1 %2635 }
 0x1a6   :  { %v1189_v8 = vsel %vm1187_vm4, %v3424_v14, %v2628_v19  ;;  %v1188_v41 = vsel %vm1187_vm4, %v3415_v15, %v2627_v12  ;;  %v2638_v27 = vunpack.i.h.bf16 %v2636_v9  ;;  %v2637_v26 = vunpack.i.l.bf16 %v2636_v9 }
 0x1a7   :  { %v2631_v38 = vpop.permute.xlu0 %2630  ;;  %v1205_v4 = vsel %vm1204_vm5, %v1188_v41, %v2622_v16  ;;  %v1206_v34 = vsel %vm1204_vm5, %v1189_v8, %v2623_v60 }
 0x1a8   :  { %v2633_v57 = vunpack.i.h.bf16 %v2631_v38  ;;  %v2632_v53 = vunpack.i.l.bf16 %v2631_v38 }
 0x1aa   :  { %v1222_v3 = vsel %vm1221_vm7, %v1205_v4, %v2632_v53  ;;  %v1223_v56 = vsel %vm1221_vm7, %v1206_v34, %v2633_v57 }
 0x1ab   :  { %v1238_v35 = vpack.c.bf16 %v1223_v56, %v1222_v3  ;;  %v2641_v19 = vpop.permute.xlu0 %2640 }
 0x1ad   :  { %v2651_v59 = vpop.permute.xlu1 %2650  ;;  %2575 = vmatprep.mubr.msk.bf16.mxu1 %vm264_vm0, %v1238_v35 }
 0x1ae   :  { %v2653_v38 = vunpack.i.h.bf16 %v2651_v59  ;;  %v2652_v50 = vunpack.i.l.bf16 %v2651_v59 }
 0x1af   :  { %v2646_v12 = vpop.permute.xlu0 %2645 }
 0x1b0   :  { %v2648_v54 = vunpack.i.h.bf16 %v2646_v12  ;;  %v2647_v46 = vunpack.i.l.bf16 %v2646_v12 }
 0x1b1   :  { %v2666_v31 = vpop.permute.xlu1 %2665 }
 0x1b2   :  { %v1191_v8 = vsel %vm1187_vm4, %v3417_v44, %v2648_v54  ;;  %v1190_v41 = vsel %vm1187_vm4, %v3394_v36, %v2647_v46  ;;  %v2642_v54 = vunpack.i.l.bf16 %v2641_v19 }
 0x1b3   :  { %v1208_v60 = vsel %vm1204_vm5, %v1191_v8, %v2638_v27  ;;  %v1207_v16 = vsel %vm1204_vm5, %v1190_v41, %v2637_v26  ;;  %v2643_v27 = vunpack.i.h.bf16 %v2641_v19  ;;  %v2668_v8 = vunpack.i.h.bf16 %v2666_v31 }
 0x1b4   :  { %v1224_v53 = vsel %vm1221_vm7, %v1207_v16, %v2652_v50  ;;  %v1225_v4 = vsel %vm1221_vm7, %v1208_v60, %v2653_v38  ;;  %v2667_v41 = vunpack.i.l.bf16 %v2666_v31 }
 0x1b5   :  { %v2656_v57 = vpop.permute.xlu0 %2655  ;;  %v1239_v56 = vpack.c.bf16 %v1225_v4, %v1224_v53 }
 0x1b6   :  { %v2658_v34 = vunpack.i.h.bf16 %v2656_v57  ;;  %v2657_v3 = vunpack.i.l.bf16 %v2656_v57  ;;  %v2676_v9 = vpop.permute.xlu1 %2675 }
 0x1b7   :  { %v2678_v59 = vunpack.i.h.bf16 %v2676_v9  ;;  %v2677_v35 = vunpack.i.l.bf16 %v2676_v9  ;;  %2576 = vmatmul.mubr.msk.bf16.vlgmr.msra.gmra.mrb[16].mxu1 %vm264_vm0, %v1239_v56 }
 0x1b8   :  { %v1193_v12 = vsel %vm1187_vm4, %v3490_v39, %v2658_v34  ;;  %v1192_v46 = vsel %vm1187_vm4, %v3479_v47, %v2657_v3 }
 0x1b9   :  { %v1195_v26 = vsel %vm1187_vm4, %v3515_v23, %v2678_v59  ;;  %v1194_v50 = vsel %vm1187_vm4, %v3477_v32, %v2677_v35  ;;  %v2661_v38 = vpop.permute.xlu0 %2660  ;;  %v1209_v53 = vsel %vm1204_vm5, %v1192_v46, %v2642_v54  ;;  %v1210_v4 = vsel %vm1204_vm5, %v1193_v12, %v2643_v27 }
 0x1ba   :  { %v2663_v60 = vunpack.i.h.bf16 %v2661_v38  ;;  %v2662_v16 = vunpack.i.l.bf16 %v2661_v38  ;;  %v2681_v57 = vpop.permute.xlu1 %2680  ;;  %v1211_v59 = vsel %vm1204_vm5, %v1194_v50, %v2667_v41  ;;  %v1212_v56 = vsel %vm1204_vm5, %v1195_v26, %v2668_v8 }
 0x1bb   :  { %v2683_v34 = vunpack.i.h.bf16 %v2681_v57  ;;  %v2682_v19 = vunpack.i.l.bf16 %v2681_v57 }
 0x1bc   :  { %v1226_v3 = vsel %vm1221_vm7, %v1209_v53, %v2662_v16  ;;  %v1227_v9 = vsel %vm1221_vm7, %v1210_v4, %v2663_v60 }
 0x1bd   :  { %v1240_v35 = vpack.c.bf16 %v1227_v9, %v1226_v3  ;;  %v1229_v31 = vsel %vm1221_vm7, %v1212_v56, %v2683_v34  ;;  %v1228_v38 = vsel %vm1221_vm7, %v1211_v59, %v2682_v19  ;;  %v2671_v22 = vpop.permute.xlu0 %2670 }
 0x1be   :  { %v2696_v24 = vpop.permute.xlu1 %2695  ;;  %v1241_v46 = vpack.c.bf16 %v1229_v31, %v1228_v38  ;;  %v2673_v8 = vunpack.i.h.bf16 %v2671_v22  ;;  %v2672_v41 = vunpack.i.l.bf16 %v2671_v22 }
 0x1bf   :  { %2579 = vmatprep.mubr.msk.bf16.mxu1 %vm264_vm0, %v1240_v35 }
 0x1c0   :  { %2580 = vmatmul.mubr.msk.bf16.gmra.mrb[20].mxu1 %vm264_vm0, %v1241_v46  ;;  %v2698_v46 = vunpack.i.h.bf16 %v2696_v24 }
 0x1c1   :  { %v2686_v12 = vpop.permute.xlu0 %2685 }
 0x1c2   :  { %v2688_v27 = vunpack.i.h.bf16 %v2686_v12  ;;  %v2687_v54 = vunpack.i.l.bf16 %v2686_v12  ;;  %v2706_v60 = vpop.permute.xlu1 %2705  ;;  %v2697_v12 = vunpack.i.l.bf16 %v2696_v24 }
 0x1c3   :  { %v2708_v16 = vunpack.i.h.bf16 %v2706_v60  ;;  %v2707_v57 = vunpack.i.l.bf16 %v2706_v60 }
 0x1c4   :  { %v1197_v50 = vsel %vm1187_vm4, %v3544_v58, %v2688_v27  ;;  %v1196_v26 = vsel %vm1187_vm4, %v3527_v55, %v2687_v54 }
 0x1c5   :  { %v2691_v53 = vpop.permute.xlu0 %2690  ;;  %v1213_v3 = vsel %vm1204_vm5, %v1196_v26, %v2672_v41  ;;  %v1214_v9 = vsel %vm1204_vm5, %v1197_v50, %v2673_v8  ;;  %v1199_v35 = vsel %vm1187_vm4, %v3577_v1, %v2708_v16  ;;  %v1198_v22 = vsel %vm1187_vm4, %v3575_v6, %v2707_v57 }
 0x1c6   :  { %v2693_v4 = vunpack.i.h.bf16 %v2691_v53  ;;  %v2692_v34 = vunpack.i.l.bf16 %v2691_v53  ;;  %v2711_v19 = vpop.permute.xlu1 %2710  ;;  %v1215_v50 = vsel %vm1204_vm5, %v1198_v22, %v2697_v12  ;;  %v1216_v26 = vsel %vm1204_vm5, %v1199_v35, %v2698_v46 }
 0x1c7   :  { %v2713_v8 = vunpack.i.h.bf16 %v2711_v19  ;;  %v2712_v57 = vunpack.i.l.bf16 %v2711_v19 }
 0x1c8   :  { %v1230_v59 = vsel %vm1221_vm7, %v1213_v3, %v2692_v34  ;;  %v1231_v56 = vsel %vm1221_vm7, %v1214_v9, %v2693_v4 }
 0x1c9   :  { %v1242_v31 = vpack.c.bf16 %v1231_v56, %v1230_v59  ;;  %v2701_v38 = vpop.permute.xlu0 %2700  ;;  %v1203_v19 = vsel %vm1187_vm4, %v3601_v30, %v2713_v8  ;;  %v1202_v12 = vsel %vm1187_vm4, %v3614_v20, %v2712_v57 }
 0x1ca   :  { %v2716_v27 = vpop.permute.xlu1 %2715  ;;  %v2703_v35 = vunpack.i.h.bf16 %v2701_v38 }
 0x1cb   :  { %v2718_v54 = vunpack.i.h.bf16 %v2716_v27  ;;  %v2717_v60 = vunpack.i.l.bf16 %v2716_v27  ;;  %2583 = vmatprep.mubr.msk.bf16.mxu1 %vm264_vm0, %v1242_v31  ;;  %v2702_v31 = vunpack.i.l.bf16 %v2701_v38 }
 0x1cd   :  { %v1233_v41 = vsel %vm1221_vm7, %v1216_v26, %v2718_v54  ;;  %v1232_v16 = vsel %vm1221_vm7, %v1215_v50, %v2717_v60  ;;  %v2726_v53 = vpop.permute.xlu0 %2725 }
 0x1ce   :  { %v1243_v4 = vpack.c.bf16 %v1233_v41, %v1232_v16  ;;  %v2721_v34 = vpop.permute.xlu1 %2720  ;;  %v2728_v3 = vunpack.i.h.bf16 %v2726_v53  ;;  %v2727_v24 = vunpack.i.l.bf16 %v2726_v53 }
 0x1cf   :  { %v2723_v9 = vunpack.i.h.bf16 %v2721_v34  ;;  %v2722_v59 = vunpack.i.l.bf16 %v2721_v34 }
 0x1d0   :  { %v1201_v56 = vsel %vm1187_vm4, %v3625_v40, %v2728_v3  ;;  %v1200_v22 = vsel %vm1187_vm4, %v3585_v48, %v2727_v24  ;;  %2584 = vmatmul.mubr.msk.bf16.gmra.mrb[24].mxu1 %vm264_vm0, %v1243_v4 }
 0x1d1   :  { %v2731_v46 = vpop.permute.xlu0 %2730  ;;  %v1217_v41 = vsel %vm1204_vm5, %v1200_v22, %v2702_v31  ;;  %v1218_v16 = vsel %vm1204_vm5, %v1201_v56, %v2703_v35  ;;  %v1220_v53 = vsel %vm1204_vm5, %v1203_v19, %v2723_v9  ;;  %v1219_v38 = vsel %vm1204_vm5, %v1202_v12, %v2722_v59 }
 0x1d2   :  { %v2736_v27 = vpop.permute.xlu1 %2735  ;;  %v2733_v54 = vunpack.i.h.bf16 %v2731_v46  ;;  %v2732_v60 = vunpack.i.l.bf16 %v2731_v46 }
 0x1d3   :  { %v2738_v50 = vunpack.i.h.bf16 %v2736_v27  ;;  %v2737_v26 = vunpack.i.l.bf16 %v2736_v27 }
 0x1d4   :  { %v1234_v4 = vsel %vm1221_vm7, %v1217_v41, %v2732_v60  ;;  %v1235_v8 = vsel %vm1221_vm7, %v1218_v16, %v2733_v54 }
 0x1d5   :  { %v1236_v34 = vsel %vm1221_vm7, %v1219_v38, %v2737_v26  ;;  %v1237_v57 = vsel %vm1221_vm7, %v1220_v53, %v2738_v50  ;;  %v1244_v3 = vpack.c.bf16 %v1235_v8, %v1234_v4 }
 0x1d6   :  { %v1245_v24 = vpack.c.bf16 %v1237_v57, %v1236_v34 }
 0x1d7   :  { %2587 = vmatprep.mubr.msk.bf16.mxu1 %vm264_vm0, %v1244_v3 }
 0x1d8   :  { %2588 = vmatmul.mubr.msk.bf16.gmra.mrb[28].mxu1 %vm264_vm0, %v1245_v24 }
 0x28a   :  { %v3819_v22 = vpop.f32.mrb[16].mxu1 }
 0x28b   :  { %v3821_v56 = vpop.f32.mrb[17].mxu1  ;;  %v1422_v31 = vmul.f32 %v3819_v22, %v3819_v22  ;;  %v1386_v54 = vsel %vm1187_vm4, %v3819_v22, 0.0 }
 0x28c   :  { %v1420_v9 = vmul.f32 %v3821_v56, %v3821_v56  ;;  %v3825_v59 = vpop.f32.mrb[18].mxu1  ;;  %v1383_v46 = vsel %vm1187_vm4, %v3821_v56, 0.0 }
 0x28d   :  { %v3827_v35 = vpop.f32.mrb[19].mxu1  ;;  %v1423_v50 = vmul.f32 %v3825_v59, %v3825_v59  ;;  %v1439_v53 = vsel %vm1187_vm4, %v1422_v31, 0.0  ;;  %v1388_v38 = vsel %vm1187_vm4, %v3825_v59, 0.0 }
 0x28e   :  { %v1384_v19 = vsel %vm1187_vm4, %v3827_v35, 0.0  ;;  %v1421_v12 = vmul.f32 %v3827_v35, %v3827_v35  ;;  %v1436_v60 = vsel %vm1187_vm4, %v1420_v9, 0.0 }
 0x28f   :  { %v1385_v27 = vadd.f32 %v1384_v19, %v1383_v46  ;;  %v1441_v3 = vsel %vm1187_vm4, %v1423_v50, 0.0 }
 0x290   :  { %v1437_v26 = vsel %vm1187_vm4, %v1421_v12, 0.0 }
 0x291   :  { %v1387_v41 = vadd.f32 %v1386_v54, %v1385_v27  ;;  %v1438_v16 = vadd.f32 %v1437_v26, %v1436_v60  ;;  %v2895_v26 = vld [vmem:[%s4484_s3 + $0x10] sm:$0xff]  }
 0x292   :  { %2591 = vmatprep.subr.bf16.mxu1 %v2895_v26 }
 0x293   :  { %v3846_v4 = vpop.f32.mrb[20].mxu1  ;;  %v1440_v8 = vadd.f32 %v1439_v53, %v1438_v16  ;;  %v1389_v57 = vadd.f32 %v1388_v38, %v1387_v41  ;;  %2592 = vmatpush3.bf16.msra.mxu1 %v2895_v26 }
 0x294   :  { %v3848_v34 = vpop.f32.mrb[21].mxu1  ;;  %v1426_v27 = vmul.f32 %v3846_v4, %v3846_v4  ;;  %v1394_v53 = vsel %vm1187_vm4, %v3846_v4, 0.0 }
 0x295   :  { %v1390_v24 = vsel %vm1187_vm4, %v3848_v34, 0.0  ;;  %v1424_v9 = vmul.f32 %v3848_v34, %v3848_v34  ;;  %v3855_v46 = vpop.f32.mrb[22].mxu1  ;;  %v1442_v19 = vadd.f32 %v1441_v3, %v1440_v8 }
 0x296   :  { %v1391_v31 = vadd.f32 %v1390_v24, %v1389_v57  ;;  %v3857_v12 = vpop.f32.mrb[23].mxu1  ;;  %v1427_v38 = vmul.f32 %v3855_v46, %v3855_v46  ;;  %v1447_v24 = vsel %vm1187_vm4, %v1426_v27, 0.0 }
 0x297   :  { %v1443_v54 = vsel %vm1187_vm4, %v1424_v9, 0.0  ;;  %v1392_v60 = vsel %vm1187_vm4, %v3857_v12, 0.0  ;;  %v1425_v50 = vmul.f32 %v3857_v12, %v3857_v12  ;;  %v1396_v9 = vsel %vm1187_vm4, %v3855_v46, 0.0 }
 0x298   :  { %v1444_v41 = vadd.f32 %v1443_v54, %v1442_v19  ;;  %v1393_v16 = vadd.f32 %v1392_v60, %v1391_v31  ;;  %v1449_v31 = vsel %vm1187_vm4, %v1427_v38, 0.0 }
 0x299   :  { %v1445_v8 = vsel %vm1187_vm4, %v1425_v50, 0.0 }
 0x29a   :  { %v1395_v57 = vadd.f32 %v1394_v53, %v1393_v16  ;;  %v1446_v3 = vadd.f32 %v1445_v8, %v1444_v41 }
 0x29c   :  { %v1448_v28 = vadd.f32 %v1447_v24, %v1446_v3  ;;  %v1397_v19 = vadd.f32 %v1396_v9, %v1395_v57 }
 0x29e   :  { %v1450_v54 = vadd.f32 %v1449_v31, %v1448_v28 }
 0x2a3   :  { %v3878_v60 = vpop.f32.mrb[24].mxu1 }
 0x2a4   :  { %v3880_v61 = vpop.f32.mrb[25].mxu1  ;;  %v1430_v53 = vmul.f32 %v3878_v60, %v3878_v60  ;;  %v1402_v24 = vsel %vm1187_vm4, %v3878_v60, 0.0 }
 0x2a5   :  { %v1398_v50 = vsel %vm1187_vm4, %v3880_v61, 0.0  ;;  %v1428_v26 = vmul.f32 %v3880_v61, %v3880_v61  ;;  %v3886_v41 = vpop.f32.mrb[26].mxu1 }
 0x2a6   :  { %v1399_v27 = vadd.f32 %v1398_v50, %v1397_v19  ;;  %v3888_v16 = vpop.f32.mrb[27].mxu1  ;;  %v1431_v9 = vmul.f32 %v3886_v41, %v3886_v41  ;;  %v1404_v29 = vsel %vm1187_vm4, %v3886_v41, 0.0 }
 0x2a7   :  { %v1451_v28 = vsel %vm1187_vm4, %v1428_v26, 0.0  ;;  %v1400_v38 = vsel %vm1187_vm4, %v3888_v16, 0.0  ;;  %v1429_v8 = vmul.f32 %v3888_v16, %v3888_v16  ;;  %v1455_v26 = vsel %vm1187_vm4, %v1430_v53, 0.0 }
 0x2a8   :  { %v1452_v57 = vadd.f32 %v1451_v28, %v1450_v54  ;;  %v1401_v3 = vadd.f32 %v1400_v38, %v1399_v27  ;;  %v1457_v28 = vsel %vm1187_vm4, %v1431_v9, 0.0 }
 0x2a9   :  { %v1453_v19 = vsel %vm1187_vm4, %v1429_v8, 0.0 }
 0x2aa   :  { %v1403_v31 = vadd.f32 %v1402_v24, %v1401_v3  ;;  %v1454_v50 = vadd.f32 %v1453_v19, %v1452_v57 }
 0x2ab   :  { %v3905_v33 = vpop.f32.mrb[28].mxu1 }
 0x2ac   :  { %v1456_v42 = vadd.f32 %v1455_v26, %v1454_v50  ;;  %v3907_v54 = vpop.f32.mrb[29].mxu1  ;;  %v1405_v27 = vadd.f32 %v1404_v29, %v1403_v31  ;;  %v1434_v19 = vmul.f32 %v3905_v33, %v3905_v33  ;;  %v1410_v43 = vsel %vm1187_vm4, %v3905_v33, 0.0 }
 0x2ad   :  { %v1406_v38 = vsel %vm1187_vm4, %v3907_v54, 0.0  ;;  %v1432_v8 = vmul.f32 %v3907_v54, %v3907_v54  ;;  %v3914_v57 = vpop.f32.mrb[30].mxu1 }
 0x2ae   :  { %v1407_v53 = vadd.f32 %v1406_v38, %v1405_v27  ;;  %v1458_v3 = vadd.f32 %v1457_v28, %v1456_v42  ;;  %v1371_v24 = vpop.f32.mrb[31].mxu1  ;;  %v1435_v21 = vmul.f32 %v3914_v57, %v3914_v57  ;;  %v1463_v38 = vsel %vm1187_vm4, %v1434_v19, 0.0 }
 0x2af   :  { %v1459_v50 = vsel %vm1187_vm4, %v1432_v8, 0.0  ;;  %v1408_v29 = vsel %vm1187_vm4, %v1371_v24, 0.0  ;;  %v1433_v31 = vmul.f32 %v1371_v24, %v1371_v24  ;;  %v1412_v8 = vsel %vm1187_vm4, %v3914_v57, 0.0 }
 0x2b0   :  { %v1460_v9 = vadd.f32 %v1459_v50, %v1458_v3  ;;  %v1409_v26 = vadd.f32 %v1408_v29, %v1407_v53  ;;  %v1465_v3 = vsel %vm1187_vm4, %v1435_v21, 0.0  ;;  %v3933_v21 = vsub.s32 0, %v3129_v62 }
 0x2b1   :  { %v1461_v27 = vsel %vm1187_vm4, %v1433_v31, 0.0 }
 0x2b2   :  { %v1411_v42 = vadd.f32 %v1410_v43, %v1409_v26  ;;  %v1462_v28 = vadd.f32 %v1461_v27, %v1460_v9 }
 0x2b4   :  { %v1413_v49 = vadd.f32 %v1412_v8, %v1411_v42  ;;  %v1464_v25 = vadd.f32 %v1463_v38, %v1462_v28 }
 0x2b6   :  { %v1414_v53 = vrot.slane %v1413_v49, 4  ;;  %v1466_v50 = vadd.f32 %v1465_v3, %v1464_v25  ;;  %v1478_v25 = vld [vmem:[%s4486_s4] sm:$0x1] }
 0x2b8   :  { %v1415_v29 = vadd.f32 %v1414_v53, %v1413_v49  ;;  %v1467_v2 = vrot.slane %v1466_v50, 4 }
 0x2ba   :  { %v1416_v45 = vrot.slane %v1415_v29, 2  ;;  %v1468_v30 = vadd.f32 %v1467_v2, %v1466_v50 }
 0x2bc   :  { %v1417_v52 = vadd.f32 %v1416_v45, %v1415_v29  ;;  %v1469_v51 = vrot.slane %v1468_v30, 2 }
 0x2be   :  { %v1418_v31 = vrot.slane %v1417_v52, 1  ;;  %v1470_v43 = vadd.f32 %v1469_v51, %v1468_v30  ;;  %v1482_v30 = vld [vmem:[%s4487_s5] sm:$0x1] }
 0x2c0   :  { %v1419_v9 = vadd.f32 %v1418_v31, %v1417_v52  ;;  %v1471_v26 = vrot.slane %v1470_v43, 1 }
 0x2c2   :  { %v1472_v19 = vadd.f32 %v1471_v26, %v1470_v43  ;;  %v1473_v27 = vmul.f32 0.0078125, %v1419_v9 }
 0x2c4   :  { %v1474_v15 = vmul.f32 0.0078125, %v1472_v19  ;;  %v1475_v13 = vmul.f32 %v1473_v27, %v1473_v27 }
 0x2c6   :  { %v1476_v42 = vsub.f32 %v1474_v15, %v1475_v13 }
 0x2c8   :  { %v1477_v28 = vmax.f32 %v1476_v42, 0.0 }
 0x2ca   :  { %v1479_v38 = vadd.f32 1e-05, %v1477_v28 }
 0x2cc   :  { %2897 = vrsqrt.f32 %v1479_v38 }
 0x2d6   :  { %v2898_v49 = vpop.eup %2897 }
 0x2d7   :  { %v1481_v2 = vmul.f32 %v2898_v49, %v1478_v25 }
 0x2d9   :  { %v1483_v51 = vmul.f32 %v1481_v2, %v1473_v27  ;;  %v3939_v52 = vrot.slane %v1481_v2, %v3933_v21 }
 0x2db   :  { %v1484_v13 = vsub.f32 %v1482_v30, %v1483_v51  ;;  %v1504_v15 = vmul.f32 %v3939_v52, %v1371_v24  ;;  %v1494_v45 = vmul.f32 %v3825_v59, %v3939_v52  ;;  %v1495_v8 = vmul.f32 %v3939_v52, %v3848_v34 }
 0x2dc   :  { %v1492_v3 = vmul.f32 %v3939_v52, %v3827_v35  ;;  %v1493_v53 = vmul.f32 %v3819_v22, %v3939_v52  ;;  %v1498_v50 = vmul.f32 %v3855_v46, %v3939_v52  ;;  %v1499_v29 = vmul.f32 %v3939_v52, %v3880_v61 }
 0x2dd   :  { %v3955_v24 = vrot.slane %v1484_v13, %v3933_v21  ;;  %v1496_v59 = vmul.f32 %v3939_v52, %v3857_v12  ;;  %v1497_v34 = vmul.f32 %v3846_v4, %v3939_v52  ;;  %v1502_v35 = vmul.f32 %v3886_v41, %v3939_v52 }
 0x2de   :  { %v1503_v22 = vmul.f32 %v3939_v52, %v3907_v54  ;;  %v1500_v46 = vmul.f32 %v3939_v52, %v3888_v16  ;;  %v1501_v61 = vmul.f32 %v3878_v60, %v3939_v52  ;;  %v1505_v31 = vmul.f32 %v3905_v33, %v3939_v52 }
 0x2df   :  { %v1526_v12 = vadd.f32 %v3955_v24, %v1504_v15  ;;  %v1516_v43 = vadd.f32 %v3955_v24, %v1494_v45  ;;  %v1517_v4 = vadd.f32 %v3955_v24, %v1495_v8  ;;  %v1514_v41 = vadd.f32 %v3955_v24, %v1492_v3  ;;  %v4678_v8 = vld [vmem:[#allocation19_spill] sm:$0xff] }
 0x2e0   :  { %v1515_v9 = vadd.f32 %v3955_v24, %v1493_v53  ;;  %v1520_v54 = vadd.f32 %v3955_v24, %v1498_v50  ;;  %v1521_v16 = vadd.f32 %v3955_v24, %v1499_v29  ;;  %v1518_v26 = vadd.f32 %v3955_v24, %v1496_v59 }
 0x2e1   :  { %v1532_v60 = vmax.f32 %v1516_v43, 0.0  ;;  %v1533_v19 = vmax.f32 %v1517_v4, 0.0  ;;  %v1530_v27 = vmax.f32 %v1514_v41, 0.0  ;;  %v1519_v38 = vadd.f32 %v3955_v24, %v1497_v34 }
 0x2e2   :  { %v1531_v33 = vmax.f32 %v1515_v9, 0.0  ;;  %v1536_v42 = vmax.f32 %v1520_v54, 0.0  ;;  %v1537_v28 = vmax.f32 %v1521_v16, 0.0  ;;  %v1542_v25 = vmax.f32 %v1526_v12, 0.0 }
 0x2e3   :  { %v3981_v49 = vadd.f32 %v1532_v60, %v3417_v44  ;;  %v3984_v2 = vadd.f32 %v1533_v19, %v3479_v47  ;;  %v3987_v30 = vadd.f32 %v1530_v27, %v3424_v14  ;;  %v1534_v45 = vmax.f32 %v1518_v26, 0.0  ;;  %v4680_v27 = vld [vmem:[#allocation40_spill] sm:$0xff] }
 0x2e4   :  { %v3990_v51 = vadd.f32 %v1531_v33, %v3394_v36  ;;  %v3993_v13 = vadd.f32 %v1536_v42, %v3515_v23  ;;  %v3996_v15 = vadd.f32 %v1537_v28, %v3527_v55  ;;  %v1535_v3 = vmax.f32 %v1519_v38, 0.0  ;;  %v4679_v36 = vld [vmem:[#allocation16_spill] sm:$0xff]  ;;  %v4681_v28 = vld [vmem:[#allocation47_spill] sm:$0xff] }
 0x2e5   :  { %v1611_v44 = vmul.f32 %v3242_v5, %v3981_v49  ;;  %v1612_v47 = vmul.f32 %v3249_v18, %v3984_v2  ;;  %v1609_v14 = vmul.f32 %v4678_v8, %v3987_v30  ;;  %v4011_v50 = vadd.f32 %v1534_v45, %v3490_v39  ;;  %v2896_v5 = vld [vmem:[%s4484_s3 + $0x18] sm:$0xff]  }
 0x2e6   :  { %v1610_v53 = vmul.f32 %v4679_v36, %v3990_v51  ;;  %v1615_v23 = vmul.f32 %v3324_v11, %v3993_v13  ;;  %v1616_v55 = vmul.f32 %v3339_v17, %v3996_v15  ;;  %v4017_v29 = vadd.f32 %v1535_v3, %v3477_v32  ;;  %2593 = vmatprep.subr.bf16.mxu1 %v2896_v5  ;;  %v4683_v45 = vld [vmem:[#allocation21_spill] sm:$0xff] }
 0x2e7   :  { %v2744_v18 = vpack.i.bf16 %v1612_v47, %v1611_v44  ;;  %v1524_v59 = vadd.f32 %v3955_v24, %v1502_v35  ;;  %v1525_v34 = vadd.f32 %v3955_v24, %v1503_v22  ;;  %v4022_v11 = vadd.f32 %v1542_v25, %v3625_v40  ;;  %2594 = vmatpush3.bf16.msra.mxu1 %v2896_v5  ;;  %v4684_v47 = vld [vmem:[#allocation9_spill] sm:$0xff] }
 0x2e8   :  { %v2739_v12 = vpack.i.bf16 %v1610_v53, %v1609_v14  ;;  %v1613_v17 = vmul.f32 %v3294_v7, %v4011_v50  ;;  %v1522_v39 = vadd.f32 %v3955_v24, %v1500_v46  ;;  %v1614_v32 = vmul.f32 %v3264_v37, %v4017_v29  ;;  %v4685_v14 = vld [vmem:[#allocation25_spill] sm:$0xff] }
 0x2e9   :  { %2745 = vrot.lane.b32.xlu1 %v2744_v18, %s2902_s18  ;;  %v1540_v43 = vmax.f32 %v1524_v59, 0.0  ;;  %v1541_v4 = vmax.f32 %v1525_v34, 0.0  ;;  %v1523_v35 = vadd.f32 %v3955_v24, %v1501_v61  ;;  %v2754_v40 = vpack.i.bf16 %v1616_v55, %v1615_v23  ;;  %v4686_v18 = vld [vmem:[#allocation5_spill] sm:$0xff] }
 0x2ea   :  { %2740 = vrot.lane.b32.xlu0 %v2739_v12, %s2902_s18  ;;  %v1538_v22 = vmax.f32 %v1522_v39, 0.0  ;;  %v1527_v41 = vadd.f32 %v3955_v24, %v1505_v31  ;;  %v1491_v7 = vmul.f32 %v3939_v52, %v3821_v56  ;;  %v2749_v46 = vpack.i.bf16 %v1614_v32, %v1613_v17  ;;  %v4687_v12 = vld [vmem:[#allocation28_spill] sm:$0xff] }
 0x2eb   :  { %v4036_v9 = vadd.f32 %v1540_v43, %v3577_v1  ;;  %v4039_v37 = vadd.f32 %v1541_v4, %v3585_v48  ;;  %v1539_v54 = vmax.f32 %v1523_v35, 0.0  ;;  %v1506_v26 = vmul.f32 %v3914_v57, %v3939_v52  ;;  %v4688_v32 = vld [vmem:[#allocation20_spill] sm:$0xff] }
 0x2ec   :  { %v4042_v61 = vadd.f32 %v1538_v22, %v3544_v58  ;;  %v1543_v16 = vmax.f32 %v1527_v41, 0.0  ;;  %v1513_v31 = vadd.f32 %v3955_v24, %v1491_v7  ;;  %v1563_v58 = vrot.slane %v3990_v51, 1  ;;  %v4689_v35 = vld [vmem:[#allocation32_spill] sm:$0xff]  ;;  %v4690_v22 = vld [vmem:[#allocation22_spill] sm:$0xff] }
 0x2ed   :  { %2755 = vrot.lane.b32.xlu1 %v2754_v40, %s2902_s18  ;;  %v1619_v56 = vmul.f32 %v3378_v0, %v4036_v9  ;;  %v1620_v1 = vmul.f32 %v3595_v10, %v4039_v37  ;;  %v4053_v48 = vadd.f32 %v1539_v54, %v3575_v6  ;;  %v1528_v60 = vadd.f32 %v3955_v24, %v1506_v26  ;;  %v4682_v24 = vld [vmem:[#allocation10_spill] sm:$0xff] }
 0x2ee   :  { %2750 = vrot.lane.b32.xlu0 %v2749_v46, %s2902_s18  ;;  %v1617_v57 = vmul.f32 %v3358_v63, %v4042_v61  ;;  %v4060_v52 = vadd.f32 %v1543_v16, %v3614_v20  ;;  %v1529_v19 = vmax.f32 %v1513_v31, 0.0  ;;  %v1564_v6 = vrot.slane %v3981_v49, 1  ;;  %v4691_v31 = vld [vmem:[#allocation26_spill] sm:$0xff] }
 0x2ef   :  { %v2764_v0 = vpack.i.bf16 %v1620_v1, %v1619_v56  ;;  %v1618_v10 = vmul.f32 %v4680_v27, %v4053_v48  ;;  %v1565_v33 = vrot.slane %v3984_v2, 1  ;;  %v1544_v42 = vmax.f32 %v1528_v60, 0.0  ;;  %v4692_v1 = vld [vmem:[#allocation27_spill] sm:$0xff]  ;;  %v4693_v60 = vld [vmem:[#allocation33_spill] sm:$0xff] }
 0x2f0   :  { %v4068_v38 = vadd.f32 %v1529_v19, %v4681_v28  ;;  %v1562_v63 = vrot.slane %v3987_v30, 1  ;;  %v1621_v25 = vmul.f32 %v4682_v24, %v4022_v11  ;;  %v1622_v44 = vmul.f32 %v4683_v45, %v4060_v52  ;;  %v4696_v24 = vld [vmem:[#allocation35_spill] sm:$0xff] }
 0x2f1   :  { %2765 = vrot.lane.b32.xlu1 %v2764_v0, %s2902_s18  ;;  %v2759_v20 = vpack.i.bf16 %v1618_v10, %v1617_v57  ;;  %v4077_v8 = vadd.f32 %v1544_v42, %v4684_v47  ;;  %v1589_v36 = vsel %vm930_vm6, %v1563_v58, %v1564_v6  ;;  %v1588_v53 = vsel %vm930_vm6, %v1564_v6, %v1565_v33  ;;  %v4694_v0 = vld [vmem:[#allocation36_spill] sm:$0xff] }
 0x2f2   :  { %v1624_v3 = vmul.f32 %v4685_v14, %v4068_v38  ;;  %v1561_v23 = vrot.slane %v4068_v38, 1  ;;  %v1590_v55 = vsel %vm930_vm6, %v1562_v63, %v1563_v58  ;;  %v1566_v5 = vrot.slane %v4011_v50, 1  ;;  %v4698_v14 = vld [vmem:[#allocation41_spill] sm:$0xff] }
 0x2f3   :  { %2760 = vrot.lane.b32.xlu0 %v2759_v20, %s2902_s18  ;;  %v1623_v59 = vmul.f32 %v4686_v18, %v4077_v8  ;;  %v2769_v34 = vpack.i.bf16 %v1622_v44, %v1621_v25  ;;  %v1595_v17 = vmul.f32 %v4687_v12, %v1589_v36  ;;  %v1594_v43 = vmul.f32 %v4688_v32, %v1590_v55  ;;  %v4697_v44 = vld [vmem:[#allocation37_spill] sm:$0xff]  ;;  %v4700_v12 = vld [vmem:[#allocation39_spill] sm:$0xff] }
 0x2f4   :  { %v4097_v39 = vsel %vm930_vm6, %v1561_v23, %v1562_v63  ;;  %v1596_v40 = vmul.f32 %v4689_v35, %v1588_v53  ;;  %v1567_v7 = vrot.slane %v4017_v29, 1  ;;  %v1587_v46 = vsel %vm930_vm6, %v1565_v33, %v1566_v5  ;;  %v4695_v63 = vld [vmem:[#allocation34_spill] sm:$0xff]  ;;  %v4702_v35 = vld [vmem:[#allocation45_spill] sm:$0xff] }
 0x2f5   :  { %v2774_v4 = vpack.i.bf16 %v1624_v3, %v1623_v59  ;;  %v1593_v41 = vmul.f32 %v4690_v22, %v4097_v39  ;;  %v1568_v54 = vrot.slane %v3993_v13, 1  ;;  %v1569_v16 = vrot.slane %v3996_v15, 1  ;;  %v4699_v59 = vld [vmem:[#allocation38_spill] sm:$0xff] }
 0x2f6   :  { %v1625_v56 = vmul.f32 %v1590_v55, %v4691_v31  ;;  %v1626_v58 = vmul.f32 %v1589_v36, %v4692_v1  ;;  %v2784_v57 = vpack.i.bf16 %v1596_v40, %v1595_v17  ;;  %v1627_v19 = vmul.f32 %v1588_v53, %v4693_v60  ;;  %v4704_v31 = vld [vmem:[#allocation44_spill] sm:$0xff]  ;;  %v4706_v60 = vld [vmem:[#allocation2_spill] sm:$0xff] }
 0x2f7   :  { %2770 = vrot.lane.b32.xlu0 %v2769_v34, %s2902_s18  ;;  %2775 = vrot.lane.b32.xlu1 %v2774_v4, %s2902_s18  ;;  %v2779_v26 = vpack.i.bf16 %v1594_v43, %v1593_v41  ;;  %v1628_v27 = vmul.f32 %v1587_v46, %v4694_v0  ;;  %v1586_v10 = vsel %vm930_vm6, %v1566_v5, %v1567_v7  ;;  %v1570_v42 = vrot.slane %v4042_v61, 1  ;;  %v4701_v43 = vld [vmem:[#allocation43_spill] sm:$0xff] }
 0x2f8   :  { %v1584_v6 = vsel %vm930_vm6, %v1568_v54, %v1569_v16  ;;  %v1585_v33 = vsel %vm930_vm6, %v1567_v7, %v1568_v54  ;;  %v2789_v28 = vpack.i.bf16 %v1626_v58, %v1625_v56  ;;  %v1597_v20 = vmul.f32 %v4695_v63, %v1587_v46  ;;  %v4705_v58 = vld [vmem:[#allocation49_spill] sm:$0xff] }
 0x2f9   :  { %v1598_v25 = vmul.f32 %v4696_v24, %v1586_v10  ;;  %v2794_v45 = vpack.i.bf16 %v1628_v27, %v1627_v19  ;;  %v1599_v47 = vmul.f32 %v4697_v44, %v1585_v33  ;;  %v1600_v3 = vmul.f32 %v4698_v14, %v1584_v6  ;;  %v4709_v24 = vld [vmem:[#allocation11_spill] sm:$0xff] }
 0x2fa   :  { %v1571_v36 = vrot.slane %v4053_v48, 1  ;;  %v1583_v53 = vsel %vm930_vm6, %v1569_v16, %v1570_v42  ;;  %v1572_v55 = vrot.slane %v4036_v9, 1  ;;  %v1573_v5 = vrot.slane %v4039_v37, 1  ;;  %v4703_v16 = vld [vmem:[#allocation42_spill] sm:$0xff] }
 0x2fb   :  { %2780 = vrot.lane.b32.xlu0 %v2779_v26, %s2903_s19  ;;  %2785 = vrot.lane.b32.xlu1 %v2784_v57, %s2903_s19  ;;  %v2799_v18 = vpack.i.bf16 %v1598_v25, %v1597_v20  ;;  %v1629_v34 = vmul.f32 %v1586_v10, %v4699_v59  ;;  %v1630_v17 = vmul.f32 %v1585_v33, %v4700_v12  ;;  %v1574_v46 = vrot.slane %v4022_v11, 1  ;;  %v4707_v33 = vld [vmem:[#allocation46_spill] sm:$0xff] }
 0x2fc   :  { %v2804_v32 = vpack.i.bf16 %v1600_v3, %v1599_v47  ;;  %v1631_v4 = vmul.f32 %v1584_v6, %v4701_v43  ;;  %v1632_v40 = vmul.f32 %v1583_v53, %v4702_v35  ;;  %v1582_v22 = vsel %vm930_vm6, %v1570_v42, %v1571_v36 }
 0x2fd   :  { %v1580_v41 = vsel %vm930_vm6, %v1572_v55, %v1573_v5  ;;  %v1581_v7 = vsel %vm930_vm6, %v1571_v36, %v1572_v55  ;;  %v2809_v54 = vpack.i.bf16 %v1630_v17, %v1629_v34  ;;  %v1601_v26 = vmul.f32 %v4703_v16, %v1583_v53  ;;  %v4711_v53 = vld [vmem:[#allocation4_spill] sm:$0xff]  ;;  %v4713_v34 = vld [vmem:[#allocation18_spill] sm:$0xff]  ;;  %v4714_v17 = vld [vmem:[#allocation23_spill] sm:$0xff] }
 0x2fe   :  { %v1602_v56 = vmul.f32 %v4704_v31, %v1582_v22  ;;  %v2814_v1 = vpack.i.bf16 %v1632_v40, %v1631_v4  ;;  %v1603_v57 = vmul.f32 %v4705_v58, %v1581_v7  ;;  %v1604_v19 = vmul.f32 %v4706_v60, %v1580_v41  ;;  %v4715_v4 = vld [vmem:[#allocation12_spill] sm:$0xff] }
 0x2ff   :  { %2790 = vrot.lane.b32.xlu0 %v2789_v28, %s2904_s20  ;;  %2795 = vrot.lane.b32.xlu1 %v2794_v45, %s2904_s20  ;;  %v1575_v0 = vrot.slane %v4060_v52, 1  ;;  %v1579_v27 = vsel %vm930_vm6, %v1573_v5, %v1574_v46  ;;  %v1576_v10 = vrot.slane %v4077_v8, 1  ;;  %v1633_v42 = vmul.f32 %v1582_v22, %v4707_v33  ;;  %v4708_v28 = vld [vmem:[#allocation48_spill] sm:$0xff]  ;;  %v4710_v45 = vld [vmem:[#allocation3_spill] sm:$0xff]  ;;  %v4717_v22 = vld [vmem:[#allocation6_spill] sm:$0xff] }
 0x300   :  { %v2819_v6 = vpack.i.bf16 %v1602_v56, %v1601_v26  ;;  %v1634_v63 = vmul.f32 %v1581_v7, %v4708_v28  ;;  %v2824_v20 = vpack.i.bf16 %v1604_v19, %v1603_v57  ;;  %v1635_v25 = vmul.f32 %v1580_v41, %v4709_v24  ;;  %v4712_v5 = vld [vmem:[#allocation24_spill] sm:$0xff]  ;;  %v4718_v7 = vld [vmem:[#allocation29_spill] sm:$0xff] }
 0x301   :  { %v1636_v44 = vmul.f32 %v1579_v27, %v4710_v45  ;;  %v1578_v47 = vsel %vm930_vm6, %v1574_v46, %v1575_v0  ;;  %v1577_v14 = vsel %vm930_vm6, %v1575_v0, %v1576_v10  ;;  %v1592_v3 = vsel %vm930_vm6, %v1576_v10, %v1561_v23  ;;  %v4716_v23 = vld [vmem:[#allocation13_spill] sm:$0xff] }
 0x302   :  { %v2829_v36 = vpack.i.bf16 %v1634_v63, %v1633_v42  ;;  %v1605_v55 = vmul.f32 %v4711_v53, %v1579_v27  ;;  %v1607_v12 = vmul.f32 %v4713_v34, %v1577_v14  ;;  %v1637_v62 = vmul.f32 %v1578_v47, %v4715_v4 }
 0x303   :  { %2800 = vrot.lane.b32.xlu0 %v2799_v18, %s2903_s19  ;;  %2805 = vrot.lane.b32.xlu1 %v2804_v32, %s2903_s19  ;;  %v1606_v18 = vmul.f32 %v4712_v5, %v1578_v47  ;;  %v2834_v59 = vpack.i.bf16 %v1636_v44, %v1635_v25  ;;  %v1608_v32 = vmul.f32 %v4714_v17, %v1592_v3 }
 0x304   :  { %v1638_v35 = vmul.f32 %v1577_v14, %v4716_v23  ;;  %v1639_v41 = vmul.f32 %v1592_v3, %v4717_v22  ;;  %v1640_v46 = vmul.f32 %v4097_v39, %v4718_v7 }
 0x305   :  { %v2839_v43 = vpack.i.bf16 %v1606_v18, %v1605_v55  ;;  %v2844_v40 = vpack.i.bf16 %v1608_v32, %v1607_v12 }
 0x306   :  { %v2854_v16 = vpack.i.bf16 %v1640_v46, %v1639_v41 }
 0x307   :  { %2810 = vrot.lane.b32.xlu0 %v2809_v54, %s2904_s20  ;;  %2815 = vrot.lane.b32.xlu1 %v2814_v1, %s2904_s20  ;;  %v2849_v54 = vpack.i.bf16 %v1638_v35, %v1637_v62 }
 0x30b   :  { %2820 = vrot.lane.b32.xlu0 %v2819_v6, %s2903_s19  ;;  %2825 = vrot.lane.b32.xlu1 %v2824_v20, %s2903_s19 }
 0x30f   :  { %2830 = vrot.lane.b32.xlu0 %v2829_v36, %s2904_s20  ;;  %2835 = vrot.lane.b32.xlu1 %v2834_v59, %s2904_s20 }
 0x313   :  { %2840 = vrot.lane.b32.xlu0 %v2839_v43, %s2903_s19  ;;  %2845 = vrot.lane.b32.xlu1 %v2844_v40, %s2903_s19 }
 0x317   :  { %2850 = vrot.lane.b32.xlu0 %v2849_v54, %s2904_s20  ;;  %2855 = vrot.lane.b32.xlu1 %v2854_v16, %s2904_s20 }
 0x35b   :  { %v2746_v26 = vpop.permute.xlu1 %2745 }
 0x35c   :  { %v2741_v31 = vpop.permute.xlu0 %2740  ;;  %v2748_v44 = vunpack.i.h.bf16 %v2746_v26  ;;  %v2747_v47 = vunpack.i.l.bf16 %v2746_v26 }
 0x35d   :  { %v2743_v63 = vunpack.i.h.bf16 %v2741_v31  ;;  %v2742_v20 = vunpack.i.l.bf16 %v2741_v31 }
 0x35f   :  { %v4186_v56 = vpop.permute.xlu1 %2755 }
 0x360   :  { %v2751_v1 = vpop.permute.xlu0 %2750 }
 0x361   :  { %v2753_v16 = vunpack.i.h.bf16 %v2751_v1  ;;  %v2752_v26 = vunpack.i.l.bf16 %v2751_v1 }
 0x363   :  { %v4188_v58 = vpop.permute.xlu1 %2765 }
 0x365   :  { %v4190_v57 = vpop.permute.xlu0 %2760 }
 0x369   :  { %v4192_v39 = vpop.permute.xlu0 %2770  ;;  %v4194_v60 = vpop.permute.xlu1 %2775 }
 0x36d   :  { %v2781_v19 = vpop.permute.xlu0 %2780  ;;  %v2786_v0 = vpop.permute.xlu1 %2785 }
 0x36e   :  { %v2783_v27 = vunpack.i.h.bf16 %v2781_v19  ;;  %v2782_v10 = vunpack.i.l.bf16 %v2781_v19  ;;  %v2788_v6 = vunpack.i.h.bf16 %v2786_v0  ;;  %v2787_v33 = vunpack.i.l.bf16 %v2786_v0 }
 0x370   :  { %v1834_v42 = vsel %vm1187_vm4, %v3987_v30, %v2783_v27  ;;  %v1833_v28 = vsel %vm1187_vm4, %v4068_v38, %v2782_v10  ;;  %v1836_v24 = vsel %vm1187_vm4, %v3981_v49, %v2788_v6  ;;  %v1835_v25 = vsel %vm1187_vm4, %v3990_v51, %v2787_v33 }
 0x371   :  { %v2791_v45 = vpop.permute.xlu0 %2790  ;;  %v2796_v14 = vpop.permute.xlu1 %2795  ;;  %v1849_v5 = vsel %vm1204_vm5, %v1833_v28, %v2742_v20  ;;  %v1850_v18 = vsel %vm1204_vm5, %v1834_v42, %v2743_v63  ;;  %v1851_v59 = vsel %vm1204_vm5, %v1835_v25, %v2747_v47  ;;  %v1852_v34 = vsel %vm1204_vm5, %v1836_v24, %v2748_v44 }
 0x372   :  { %v2793_v3 = vunpack.i.h.bf16 %v2791_v45  ;;  %v2792_v36 = vunpack.i.l.bf16 %v2791_v45  ;;  %v2798_v53 = vunpack.i.h.bf16 %v2796_v14  ;;  %v2797_v55 = vunpack.i.l.bf16 %v2796_v14 }
 0x373   :  { %v2758_v27 = vunpack.i.h.bf16 %v4186_v56  ;;  %v2757_v10 = vunpack.i.l.bf16 %v4186_v56 }
 0x374   :  { %v1865_v12 = vsel %vm1221_vm7, %v1849_v5, %v2792_v36  ;;  %v1866_v17 = vsel %vm1221_vm7, %v1850_v18, %v2793_v3  ;;  %v1867_v32 = vsel %vm1221_vm7, %v1851_v59, %v2797_v55  ;;  %v1868_v43 = vsel %vm1221_vm7, %v1852_v34, %v2798_v53 }
 0x375   :  { %v1881_v4 = vpack.c.bf16 %v1866_v17, %v1865_v12  ;;  %v2801_v62 = vpop.permute.xlu0 %2800  ;;  %v1882_v23 = vpack.c.bf16 %v1868_v43, %v1867_v32  ;;  %v2806_v35 = vpop.permute.xlu1 %2805  ;;  %v2763_v17 = vunpack.i.h.bf16 %v4190_v57  ;;  %v2762_v32 = vunpack.i.l.bf16 %v4190_v57 }
 0x376   :  { %v2803_v40 = vunpack.i.h.bf16 %v2801_v62  ;;  %v2802_v22 = vunpack.i.l.bf16 %v2801_v62  ;;  %v2808_v41 = vunpack.i.h.bf16 %v2806_v35  ;;  %v2807_v7 = vunpack.i.l.bf16 %v2806_v35 }
 0x377   :  { %2595 = vmatprep.mubr.msk.bf16.mxu1 %vm264_vm0, %v1881_v4  ;;  %v2767_v35 = vunpack.i.l.bf16 %v4188_v58 }
 0x378   :  { %v1838_v46 = vsel %vm1187_vm4, %v4011_v50, %v2803_v40  ;;  %v1837_v54 = vsel %vm1187_vm4, %v3984_v2, %v2802_v22  ;;  %2596 = vmatmul.mubr.msk.bf16.vlgmr.msra.gmra.mrb[32].mxu1 %vm264_vm0, %v1882_v23  ;;  %v1840_v31 = vsel %vm1187_vm4, %v3993_v13, %v2808_v41  ;;  %v1839_v19 = vsel %vm1187_vm4, %v4017_v29, %v2807_v7 }
 0x379   :  { %v2811_v0 = vpop.permute.xlu0 %2810  ;;  %v2816_v6 = vpop.permute.xlu1 %2815  ;;  %v1853_v20 = vsel %vm1204_vm5, %v1837_v54, %v2752_v26  ;;  %v1854_v1 = vsel %vm1204_vm5, %v1838_v46, %v2753_v16  ;;  %v1855_v24 = vsel %vm1204_vm5, %v1839_v19, %v2757_v10  ;;  %v1856_v25 = vsel %vm1204_vm5, %v1840_v31, %v2758_v27 }
 0x37a   :  { %v2813_v33 = vunpack.i.h.bf16 %v2811_v0  ;;  %v2812_v42 = vunpack.i.l.bf16 %v2811_v0  ;;  %v2818_v28 = vunpack.i.h.bf16 %v2816_v6  ;;  %v2817_v63 = vunpack.i.l.bf16 %v2816_v6 }
 0x37b   :  { %v2768_v23 = vunpack.i.h.bf16 %v4188_v58 }
 0x37c   :  { %v1869_v45 = vsel %vm1221_vm7, %v1853_v20, %v2812_v42  ;;  %v1870_v44 = vsel %vm1221_vm7, %v1854_v1, %v2813_v33  ;;  %v1871_v47 = vsel %vm1221_vm7, %v1855_v24, %v2817_v63  ;;  %v1872_v56 = vsel %vm1221_vm7, %v1856_v25, %v2818_v28 }
 0x37d   :  { %v1883_v14 = vpack.c.bf16 %v1870_v44, %v1869_v45  ;;  %v2821_v3 = vpop.permute.xlu0 %2820  ;;  %v1884_v36 = vpack.c.bf16 %v1872_v56, %v1871_v47  ;;  %v2826_v53 = vpop.permute.xlu1 %2825  ;;  %v2773_v25 = vunpack.i.h.bf16 %v4192_v39  ;;  %v2772_v45 = vunpack.i.l.bf16 %v4192_v39 }
 0x37e   :  { %v2823_v55 = vunpack.i.h.bf16 %v2821_v3  ;;  %v2822_v5 = vunpack.i.l.bf16 %v2821_v3  ;;  %v2828_v18 = vunpack.i.h.bf16 %v2826_v53  ;;  %v2827_v59 = vunpack.i.l.bf16 %v2826_v53 }
 0x37f   :  { %2599 = vmatprep.mubr.msk.bf16.mxu1 %vm264_vm0, %v1883_v14  ;;  %v2778_v14 = vunpack.i.h.bf16 %v4194_v60  ;;  %v2777_v3 = vunpack.i.l.bf16 %v4194_v60 }
 0x380   :  { %v1842_v34 = vsel %vm1187_vm4, %v4042_v61, %v2823_v55  ;;  %v1841_v12 = vsel %vm1187_vm4, %v3996_v15, %v2822_v5  ;;  %2600 = vmatmul.mubr.msk.bf16.gmra.mrb[36].mxu1 %vm264_vm0, %v1884_v36  ;;  %v1844_v43 = vsel %vm1187_vm4, %v4036_v9, %v2828_v18  ;;  %v1843_v4 = vsel %vm1187_vm4, %v4053_v48, %v2827_v59 }
 0x381   :  { %v2831_v62 = vpop.permute.xlu0 %2830  ;;  %v2836_v40 = vpop.permute.xlu1 %2835  ;;  %v1857_v54 = vsel %vm1204_vm5, %v1841_v12, %v2762_v32  ;;  %v1858_v57 = vsel %vm1204_vm5, %v1842_v34, %v2763_v17  ;;  %v1859_v16 = vsel %vm1204_vm5, %v1843_v4, %v2767_v35  ;;  %v1860_v26 = vsel %vm1204_vm5, %v1844_v43, %v2768_v23 }
 0x382   :  { %v2833_v22 = vunpack.i.h.bf16 %v2831_v62  ;;  %v2832_v41 = vunpack.i.l.bf16 %v2831_v62  ;;  %v2838_v7 = vunpack.i.h.bf16 %v2836_v40  ;;  %v2837_v46 = vunpack.i.l.bf16 %v2836_v40 }
 0x384   :  { %v1873_v31 = vsel %vm1221_vm7, %v1857_v54, %v2832_v41  ;;  %v1874_v19 = vsel %vm1221_vm7, %v1858_v57, %v2833_v22  ;;  %v1875_v0 = vsel %vm1221_vm7, %v1859_v16, %v2837_v46  ;;  %v1876_v58 = vsel %vm1221_vm7, %v1860_v26, %v2838_v7 }
 0x385   :  { %v1885_v27 = vpack.c.bf16 %v1874_v19, %v1873_v31  ;;  %v2841_v10 = vpop.permute.xlu0 %2840  ;;  %v1886_v6 = vpack.c.bf16 %v1876_v58, %v1875_v0  ;;  %v2846_v33 = vpop.permute.xlu1 %2845 }
 0x386   :  { %v2843_v42 = vunpack.i.h.bf16 %v2841_v10  ;;  %v2842_v28 = vunpack.i.l.bf16 %v2841_v10  ;;  %v2848_v63 = vunpack.i.h.bf16 %v2846_v33  ;;  %v2847_v20 = vunpack.i.l.bf16 %v2846_v33 }
 0x387   :  { %2603 = vmatprep.mubr.msk.bf16.mxu1 %vm264_vm0, %v1885_v27 }
 0x388   :  { %v1846_v1 = vsel %vm1187_vm4, %v4022_v11, %v2843_v42  ;;  %v1845_v24 = vsel %vm1187_vm4, %v4039_v37, %v2842_v28  ;;  %2604 = vmatmul.mubr.msk.bf16.gmra.mrb[40].mxu1 %vm264_vm0, %v1886_v6  ;;  %v1848_v44 = vsel %vm1187_vm4, %v4077_v8, %v2848_v63  ;;  %v1847_v47 = vsel %vm1187_vm4, %v4060_v52, %v2847_v20 }
 0x389   :  { %v2851_v56 = vpop.permute.xlu0 %2850  ;;  %v2856_v36 = vpop.permute.xlu1 %2855  ;;  %v1861_v59 = vsel %vm1204_vm5, %v1845_v24, %v2772_v45  ;;  %v1862_v39 = vsel %vm1204_vm5, %v1846_v1, %v2773_v25  ;;  %v1863_v34 = vsel %vm1204_vm5, %v1847_v47, %v2777_v3  ;;  %v1864_v12 = vsel %vm1204_vm5, %v1848_v44, %v2778_v14 }
 0x38a   :  { %v2853_v53 = vunpack.i.h.bf16 %v2851_v56  ;;  %v2852_v55 = vunpack.i.l.bf16 %v2851_v56  ;;  %v2858_v5 = vunpack.i.h.bf16 %v2856_v36  ;;  %v2857_v18 = vunpack.i.l.bf16 %v2856_v36 }
 0x38c   :  { %v1877_v17 = vsel %vm1221_vm7, %v1861_v59, %v2852_v55  ;;  %v1878_v32 = vsel %vm1221_vm7, %v1862_v39, %v2853_v53  ;;  %v1880_v43 = vsel %vm1221_vm7, %v1864_v12, %v2858_v5  ;;  %v1879_v60 = vsel %vm1221_vm7, %v1863_v34, %v2857_v18 }
 0x38d   :  { %v1887_v4 = vpack.c.bf16 %v1878_v32, %v1877_v17  ;;  %v1888_v62 = vpack.c.bf16 %v1880_v43, %v1879_v60 }
 0x38f   :  { %2607 = vmatprep.mubr.msk.bf16.mxu1 %vm264_vm0, %v1887_v4 }
 0x390   :  { %2608 = vmatmul.mubr.msk.bf16.gmra.mrb[44].mxu1 %vm264_vm0, %v1888_v62  ;;  %vm2271_vm0 = vcmask 60416  }
 0x44b   :  { %v4278_v23 = vpop.f32.mrb[32].mxu1 }
 0x44c   :  { %v4280_v35 = vpop.f32.mrb[33].mxu1  ;;  %v2066_v7 = vmul.f32 %v4278_v23, %v4278_v23  ;;  %v2030_v26 = vsel %vm1187_vm4, %v4278_v23, 0.0 }
 0x44d   :  { %v2064_v40 = vmul.f32 %v4280_v35, %v4280_v35  ;;  %v4284_v22 = vpop.f32.mrb[34].mxu1  ;;  %v2027_v46 = vsel %vm1187_vm4, %v4280_v35, 0.0 }
 0x44e   :  { %v4286_v41 = vpop.f32.mrb[35].mxu1  ;;  %v2067_v19 = vmul.f32 %v4284_v22, %v4284_v22  ;;  %v2083_v10 = vsel %vm1187_vm4, %v2066_v7, 0.0  ;;  %v2032_v6 = vsel %vm1187_vm4, %v4284_v22, 0.0 }
 0x44f   :  { %v2028_v54 = vsel %vm1187_vm4, %v4286_v41, 0.0  ;;  %v2065_v57 = vmul.f32 %v4286_v41, %v4286_v41  ;;  %v2080_v31 = vsel %vm1187_vm4, %v2064_v40, 0.0 }
 0x450   :  { %v2029_v16 = vadd.f32 %v2028_v54, %v2027_v46  ;;  %v2085_v20 = vsel %vm1187_vm4, %v2067_v19, 0.0 }
 0x451   :  { %v2081_v0 = vsel %vm1187_vm4, %v2065_v57, 0.0 }
 0x452   :  { %v2031_v58 = vadd.f32 %v2030_v26, %v2029_v16  ;;  %v2082_v27 = vadd.f32 %v2081_v0, %v2080_v31 }
 0x453   :  { %v4305_v33 = vpop.f32.mrb[36].mxu1 }
 0x454   :  { %v2084_v42 = vadd.f32 %v2083_v10, %v2082_v27  ;;  %v4307_v28 = vpop.f32.mrb[37].mxu1  ;;  %v2033_v63 = vadd.f32 %v2032_v6, %v2031_v58  ;;  %v2070_v56 = vmul.f32 %v4305_v33, %v4305_v33  ;;  %v2038_v5 = vsel %vm1187_vm4, %v4305_v33, 0.0 }
 0x455   :  { %v2034_v1 = vsel %vm1187_vm4, %v4307_v28, 0.0  ;;  %v2068_v24 = vmul.f32 %v4307_v28, %v4307_v28  ;;  %v4314_v25 = vpop.f32.mrb[38].mxu1 }
 0x456   :  { %v2035_v45 = vadd.f32 %v2034_v1, %v2033_v63  ;;  %v2086_v44 = vadd.f32 %v2085_v20, %v2084_v42  ;;  %v4316_v47 = vpop.f32.mrb[39].mxu1  ;;  %v2071_v18 = vmul.f32 %v4314_v25, %v4314_v25  ;;  %v2091_v12 = vsel %vm1187_vm4, %v2070_v56, 0.0 }
 0x457   :  { %v2087_v14 = vsel %vm1187_vm4, %v2068_v24, 0.0  ;;  %v2036_v3 = vsel %vm1187_vm4, %v4316_v47, 0.0  ;;  %v2069_v36 = vmul.f32 %v4316_v47, %v4316_v47  ;;  %v2040_v17 = vsel %vm1187_vm4, %v4314_v25, 0.0 }
 0x458   :  { %v2088_v53 = vadd.f32 %v2087_v14, %v2086_v44  ;;  %v2037_v55 = vadd.f32 %v2036_v3, %v2035_v45  ;;  %v2093_v62 = vsel %vm1187_vm4, %v2071_v18, 0.0 }
 0x459   :  { %v2089_v59 = vsel %vm1187_vm4, %v2069_v36, 0.0 }
 0x45a   :  { %v2039_v39 = vadd.f32 %v2038_v5, %v2037_v55  ;;  %v2090_v34 = vadd.f32 %v2089_v59, %v2088_v53 }
 0x45b   :  { %v4333_v32 = vpop.f32.mrb[40].mxu1 }
 0x45c   :  { %v2092_v43 = vadd.f32 %v2091_v12, %v2090_v34  ;;  %v4335_v60 = vpop.f32.mrb[41].mxu1  ;;  %v2041_v4 = vadd.f32 %v2040_v17, %v2039_v39  ;;  %v2074_v26 = vmul.f32 %v4333_v32, %v4333_v32  ;;  %v2046_v10 = vsel %vm1187_vm4, %v4333_v32, 0.0 }
 0x45d   :  { %v2042_v40 = vsel %vm1187_vm4, %v4335_v60, 0.0  ;;  %v2072_v7 = vmul.f32 %v4335_v60, %v4335_v60  ;;  %v4342_v46 = vpop.f32.mrb[42].mxu1 }
 0x45e   :  { %v2043_v54 = vadd.f32 %v2042_v40, %v2041_v4  ;;  %v2094_v57 = vadd.f32 %v2093_v62, %v2092_v43  ;;  %v4344_v16 = vpop.f32.mrb[43].mxu1  ;;  %v2075_v6 = vmul.f32 %v4342_v46, %v4342_v46  ;;  %v2099_v1 = vsel %vm1187_vm4, %v2074_v26, 0.0 }
 0x45f   :  { %v2095_v31 = vsel %vm1187_vm4, %v2072_v7, 0.0  ;;  %v2044_v19 = vsel %vm1187_vm4, %v4344_v16, 0.0  ;;  %v2073_v0 = vmul.f32 %v4344_v16, %v4344_v16  ;;  %v2048_v24 = vsel %vm1187_vm4, %v4342_v46, 0.0 }
 0x460   :  { %v2096_v58 = vadd.f32 %v2095_v31, %v2094_v57  ;;  %v2045_v27 = vadd.f32 %v2044_v19, %v2043_v54  ;;  %v2101_v3 = vsel %vm1187_vm4, %v2075_v6, 0.0 }
 0x461   :  { %v2097_v42 = vsel %vm1187_vm4, %v2073_v0, 0.0 }
 0x462   :  { %v2047_v63 = vadd.f32 %v2046_v10, %v2045_v27  ;;  %v2098_v20 = vadd.f32 %v2097_v42, %v2096_v58 }
 0x463   :  { %v4361_v45 = vpop.f32.mrb[44].mxu1 }
 0x464   :  { %v2100_v44 = vadd.f32 %v2099_v1, %v2098_v20  ;;  %v4363_v56 = vpop.f32.mrb[45].mxu1  ;;  %v2049_v14 = vadd.f32 %v2048_v24, %v2047_v63  ;;  %v2078_v39 = vmul.f32 %v4361_v45, %v4361_v45  ;;  %v2054_v62 = vsel %vm1187_vm4, %v4361_v45, 0.0 }
 0x465   :  { %v2050_v36 = vsel %vm1187_vm4, %v4363_v56, 0.0  ;;  %v2076_v53 = vmul.f32 %v4363_v56, %v4363_v56  ;;  %v2610_v55 = vpop.f32.mrb[46].mxu1 }
 0x466   :  { %v2051_v5 = vadd.f32 %v2050_v36, %v2049_v14  ;;  %v2102_v18 = vadd.f32 %v2101_v3, %v2100_v44  ;;  %v2015_v59 = vpop.f32.mrb[47].mxu1  ;;  %v2079_v40 = vmul.f32 %v2610_v55, %v2610_v55  ;;  %v2107_v26 = vsel %vm1187_vm4, %v2078_v39, 0.0 }
 0x467   :  { %v2103_v34 = vsel %vm1187_vm4, %v2076_v53, 0.0  ;;  %v2052_v12 = vsel %vm1187_vm4, %v2015_v59, 0.0  ;;  %v2077_v17 = vmul.f32 %v2015_v59, %v2015_v59  ;;  %v2056_v31 = vsel %vm1187_vm4, %v2610_v55, 0.0 }
 0x468   :  { %v2104_v43 = vadd.f32 %v2103_v34, %v2102_v18  ;;  %v2053_v4 = vadd.f32 %v2052_v12, %v2051_v5  ;;  %v2109_v58 = vsel %vm1187_vm4, %v2079_v40, 0.0  ;;  %v2416_v40 = vld [vmem:[%s4487_s5 + $0x1] sm:$0x1] }
 0x469   :  { %v2105_v7 = vsel %vm1187_vm4, %v2077_v17, 0.0 }
 0x46a   :  { %v2055_v54 = vadd.f32 %v2054_v62, %v2053_v4  ;;  %v2106_v57 = vadd.f32 %v2105_v7, %v2104_v43  ;;  %v2415_v43 = vld [vmem:[%s4486_s4 + $0x1] sm:$0x1] }
 0x46c   :  { %v2057_v19 = vadd.f32 %v2056_v31, %v2055_v54  ;;  %v2108_v0 = vadd.f32 %v2107_v26, %v2106_v57 }
 0x46e   :  { %v2058_v27 = vrot.slane %v2057_v19, 4  ;;  %v2110_v10 = vadd.f32 %v2109_v58, %v2108_v0 }
 0x470   :  { %v2059_v6 = vadd.f32 %v2058_v27, %v2057_v19  ;;  %v2111_v42 = vrot.slane %v2110_v10, 4 }
 0x472   :  { %v2060_v63 = vrot.slane %v2059_v6, 2  ;;  %v2112_v20 = vadd.f32 %v2111_v42, %v2110_v10 }
 0x474   :  { %v2061_v1 = vadd.f32 %v2060_v63, %v2059_v6  ;;  %v2113_v24 = vrot.slane %v2112_v20, 2 }
 0x476   :  { %v2062_v44 = vrot.slane %v2061_v1, 1  ;;  %v2114_v14 = vadd.f32 %v2113_v24, %v2112_v20 }
 0x478   :  { %v2063_v3 = vadd.f32 %v2062_v44, %v2061_v1  ;;  %v2115_v36 = vrot.slane %v2114_v14, 1 }
 0x47a   :  { %v2116_v53 = vadd.f32 %v2115_v36, %v2114_v14  ;;  %v2117_v5 = vmul.f32 0.0078125, %v2063_v3 }
 0x47c   :  { %v2118_v18 = vmul.f32 0.0078125, %v2116_v53  ;;  %v2119_v39 = vmul.f32 %v2117_v5, %v2117_v5 }
 0x47e   :  { %v2120_v34 = vsub.f32 %v2118_v18, %v2119_v39 }
 0x480   :  { %v2121_v12 = vmax.f32 %v2120_v34, 0.0 }
 0x482   :  { %v2124_v17 = vadd.f32 1e-05, %v2121_v12 }
 0x484   :  { %2899 = vrsqrt.f32 %v2124_v17 }
 0x48e   :  { %v2900_v4 = vpop.eup %2899 }
 0x48f   :  { %v2126_v62 = vmul.f32 %v2900_v4, %v2415_v43 }
 0x491   :  { %v2129_v7 = vmul.f32 %v2126_v62, %v2117_v5  ;;  %v2135_v54 = vrot.slane %v2126_v62, %v3933_v21 }
 0x493   :  { %v2130_v57 = vsub.f32 %v2416_v40, %v2129_v7  ;;  %v2137_v26 = vmul.f32 %v2135_v54, %v4280_v35  ;;  %v2138_v31 = vmul.f32 %v2135_v54, %v4286_v41  ;;  %v2139_v19 = vmul.f32 %v4278_v23, %v2135_v54 }
 0x494   :  { %v2140_v0 = vmul.f32 %v4284_v22, %v2135_v54  ;;  %v2141_v58 = vmul.f32 %v2135_v54, %v4307_v28  ;;  %v2142_v27 = vmul.f32 %v2135_v54, %v4316_v47  ;;  %v2143_v10 = vmul.f32 %v4305_v33, %v2135_v54 }
 0x495   :  { %v2144_v6 = vmul.f32 %v4314_v25, %v2135_v54  ;;  %v2145_v42 = vmul.f32 %v2135_v54, %v4335_v60  ;;  %v2146_v63 = vmul.f32 %v2135_v54, %v4344_v16  ;;  %v2147_v35 = vmul.f32 %v4333_v32, %v2135_v54 }
 0x496   :  { %v2148_v41 = vmul.f32 %v4342_v46, %v2135_v54  ;;  %v2149_v23 = vmul.f32 %v2135_v54, %v4363_v56  ;;  %v2150_v20 = vmul.f32 %v2135_v54, %v2015_v59  ;;  %v2151_v22 = vmul.f32 %v4361_v45, %v2135_v54 }
 0x497   :  { %v2152_v28 = vmul.f32 %v2610_v55, %v2135_v54  ;;  %v2157_v47 = vrot.slane %v2130_v57, %v3933_v21 }
 0x499   :  { %v2159_v1 = vadd.f32 %v2157_v47, %v2137_v26  ;;  %v2160_v33 = vadd.f32 %v2157_v47, %v2138_v31  ;;  %v2161_v24 = vadd.f32 %v2157_v47, %v2139_v19  ;;  %v2162_v25 = vadd.f32 %v2157_v47, %v2140_v0 }
 0x49a   :  { %v2163_v44 = vadd.f32 %v2157_v47, %v2141_v58  ;;  %v2164_v60 = vadd.f32 %v2157_v47, %v2142_v27  ;;  %v2165_v14 = vadd.f32 %v2157_v47, %v2143_v10  ;;  %v2166_v16 = vadd.f32 %v2157_v47, %v2144_v6 }
 0x49b   :  { %v2167_v3 = vadd.f32 %v2157_v47, %v2145_v42  ;;  %v2168_v32 = vadd.f32 %v2157_v47, %v2146_v63  ;;  %v2169_v36 = vadd.f32 %v2157_v47, %v2147_v35  ;;  %v2170_v46 = vadd.f32 %v2157_v47, %v2148_v41 }
 0x49c   :  { %v2171_v53 = vadd.f32 %v2157_v47, %v2149_v23  ;;  %v2172_v56 = vadd.f32 %v2157_v47, %v2150_v20  ;;  %v2173_v59 = vadd.f32 %v2157_v47, %v2151_v22  ;;  %v2174_v5 = vadd.f32 %v2157_v47, %v2152_v28 }
 0x49d   :  { %v2175_v45 = vmax.f32 %v2159_v1, 0.0  ;;  %v2176_v55 = vmax.f32 %v2160_v33, 0.0  ;;  %v2177_v21 = vmax.f32 %v2161_v24, 0.0  ;;  %v2178_v18 = vmax.f32 %v2162_v25, 0.0 }
 0x49e   :  { %v2179_v39 = vmax.f32 %v2163_v44, 0.0  ;;  %v2180_v34 = vmax.f32 %v2164_v60, 0.0  ;;  %v2181_v12 = vmax.f32 %v2165_v14, 0.0  ;;  %v2182_v17 = vmax.f32 %v2166_v16, 0.0 }
 0x49f   :  { %v2183_v43 = vmax.f32 %v2167_v3, 0.0  ;;  %v2184_v4 = vmax.f32 %v2168_v32, 0.0  ;;  %v2185_v62 = vmax.f32 %v2169_v36, 0.0  ;;  %v2186_v40 = vmax.f32 %v2170_v46, 0.0 }
 0x4a0   :  { %v2187_v7 = vmax.f32 %v2171_v53, 0.0  ;;  %v2188_v54 = vmax.f32 %v2172_v56, 0.0  ;;  %v2189_v57 = vmax.f32 %v2173_v59, 0.0  ;;  %v2190_v26 = vmax.f32 %v2174_v5, 0.0 }
 0x4a1   :  { %v2191_v31 = vadd.f32 %v2175_v45, %v4068_v38  ;;  %v2192_v19 = vadd.f32 %v2176_v55, %v3987_v30  ;;  %v2193_v0 = vadd.f32 %v2177_v21, %v3990_v51  ;;  %v2194_v58 = vadd.f32 %v2178_v18, %v3981_v49 }
 0x4a2   :  { %v2195_v27 = vadd.f32 %v2179_v39, %v3984_v2  ;;  %v2196_v10 = vadd.f32 %v2180_v34, %v4011_v50  ;;  %v2197_v6 = vadd.f32 %v2181_v12, %v4017_v29  ;;  %v2198_v42 = vadd.f32 %v2182_v17, %v3993_v13 }
 0x4a3   :  { %v2199_v63 = vadd.f32 %v2183_v43, %v3996_v15  ;;  %v2200_v35 = vadd.f32 %v2184_v4, %v4042_v61  ;;  %v2201_v38 = vadd.f32 %v2185_v62, %v4053_v48  ;;  %v2202_v30 = vadd.f32 %v2186_v40, %v4036_v9 }
 0x4a4   :  { %v2203_v51 = vadd.f32 %v2187_v7, %v4039_v37  ;;  %v2204_v49 = vadd.f32 %v2188_v54, %v4022_v11  ;;  %v2205_v2 = vadd.f32 %v2189_v57, %v4060_v52  ;;  %v2206_v50 = vadd.f32 %v2190_v26, %v4077_v8 }
 0x4a5   :  { %v2433_v41 = vpack.c.bf16 %v2191_v31, %v2191_v31  ;;  %v2434_v29 = vpack.c.bf16 %v2192_v19, %v2192_v19  ;;  %v2435_v23 = vpack.c.bf16 %v2193_v0, %v2193_v0  ;;  %v2436_v13 = vpack.c.bf16 %v2194_v58, %v2194_v58 }
 0x4a6   :  { %v2437_v20 = vpack.c.bf16 %v2195_v27, %v2195_v27  ;;  %v2438_v15 = vpack.c.bf16 %v2196_v10, %v2196_v10  ;;  %v2439_v22 = vpack.c.bf16 %v2197_v6, %v2197_v6  ;;  %v2440_v61 = vpack.c.bf16 %v2198_v42, %v2198_v42 }
 0x4a7   :  { %v2441_v28 = vpack.c.bf16 %v2199_v63, %v2199_v63  ;;  %v2442_v48 = vpack.c.bf16 %v2200_v35, %v2200_v35  ;;  %v2443_v47 = vpack.c.bf16 %v2201_v38, %v2201_v38  ;;  %v2444_v9 = vpack.c.bf16 %v2202_v30, %v2202_v30  ;;  %2272 = vst.msk [vmem:[%s4488_s6] sm:$0xf] %vm2271_vm0, %v2433_v41 }
 0x4a8   :  { %2273 = vst.msk [vmem:[%s4488_s6 + $0x4] sm:$0xf] %vm2271_vm0, %v2434_v29  ;;  %2274 = vst.msk [vmem:[%s4488_s6 + $0x8] sm:$0xf] %vm2271_vm0, %v2435_v23  ;;  %v2445_v11 = vpack.c.bf16 %v2203_v51, %v2203_v51  ;;  %v2446_v37 = vpack.c.bf16 %v2204_v49, %v2204_v49  ;;  %v2447_v52 = vpack.c.bf16 %v2205_v2, %v2205_v2 }
 0x4a9   :  { %2275 = vst.msk [vmem:[%s4488_s6 + $0xc] sm:$0xf] %vm2271_vm0, %v2436_v13  ;;  %v2448_v8 = vpack.c.bf16 %v2206_v50, %v2206_v50  ;;  %2276 = vst.msk [vmem:[%s4488_s6 + $0x10] sm:$0xf] %vm2271_vm0, %v2437_v20 }
 0x4aa   :  { %2277 = vst.msk [vmem:[%s4488_s6 + $0x14] sm:$0xf] %vm2271_vm0, %v2438_v15  ;;  %2278 = vst.msk [vmem:[%s4488_s6 + $0x18] sm:$0xf] %vm2271_vm0, %v2439_v22 }
 0x4ab   :  { %2279 = vst.msk [vmem:[%s4488_s6 + $0x1c] sm:$0xf] %vm2271_vm0, %v2440_v61  ;;  %2280 = vst.msk [vmem:[%s4488_s6 + $0x20] sm:$0xf] %vm2271_vm0, %v2441_v28 }
 0x4ac   :  { %2281 = vst.msk [vmem:[%s4488_s6 + $0x24] sm:$0xf] %vm2271_vm0, %v2442_v48  ;;  %2282 = vst.msk [vmem:[%s4488_s6 + $0x28] sm:$0xf] %vm2271_vm0, %v2443_v47 }
 0x4ad   :  { %2283 = vst.msk [vmem:[%s4488_s6 + $0x2c] sm:$0xf] %vm2271_vm0, %v2444_v9  ;;  %2284 = vst.msk [vmem:[%s4488_s6 + $0x30] sm:$0xf] %vm2271_vm0, %v2445_v11 }
 0x4ae   :  { %2285 = vst.msk [vmem:[%s4488_s6 + $0x34] sm:$0xf] %vm2271_vm0, %v2446_v37  ;;  %2286 = vst.msk [vmem:[%s4488_s6 + $0x38] sm:$0xf] %vm2271_vm0, %v2447_v52 }
 0x4af   :  { %2287 = vst.msk [vmem:[%s4488_s6 + $0x3c] sm:$0xf] %vm2271_vm0, %v2448_v8 }

</bundles_post_ra>
